<compile_context>
chip_gen: v7x
topology: tpu7x:2x2x1
jax: 0.10.0
libtpu: 0.0.40
codegen_flags: <defaults>
</compile_context>

<pallas_src>
import jax
import jax.numpy as jnp
from jax import lax
from jax.experimental import pallas as pl
from jax.experimental.pallas import tpu as pltpu

EPS = 1e-5
MXU_DTYPE = jnp.bfloat16     # MXU operand + inter-stage activation dtype.
LANES = 128


def _round_up(v, m):
    return (v + m - 1) // m * m


def _pad_last(a, to):
    pad = to - a.shape[-1]
    if pad == 0:
        return a
    return jnp.pad(a, [(0, 0)] * (a.ndim - 1) + [(0, pad)])


def _row_tile(m, row_bytes):
    """Row tile for the flattened (N*H*W, C) stages: as large as possible
    (amortizes ~0.35us per-grid-step overhead) while the double-buffered
    blocks stay well inside scoped VMEM, and still dividing m."""
    cap = max(8, (8 << 20) // (2 * max(row_bytes, 1)))
    target = min(1024, cap, max(8, m // 4))
    for t in (1024, 512, 256, 128, 64, 32, 16, 8):
        if t <= target and m % t == 0:
            return t
    return m


def _h_tile(H, W, c):
    """Rows per conv3x3 tile: keep the bf16 im2col lhs under ~2 MiB and prefer
    >=2 tiles per image so the DMA pipeline has grid steps even for small N."""
    cap = max(1, (2 << 20) // (W * 9 * c * 2))
    divs = [t for t in range(1, H + 1) if H % t == 0 and t <= cap]
    halved = [t for t in divs if t <= max(1, H // 2)]
    if halved and max(halved) * 4 >= min(H, cap):
        return max(halved)
    return max(divs) if divs else 1


# --------------------------------------------------------------------------
# Shared epilogue: store bf16 activation + per-tile BN statistics.
# --------------------------------------------------------------------------
def _store_act_and_stats(h_f32, h_ref, st_ref):
    hq = h_f32.astype(h_ref.dtype)                 # bf16 activation to HBM
    h_ref[...] = hq
    hf = hq.astype(jnp.float32)                    # stats match stored value
    st = jnp.concatenate([jnp.sum(hf, axis=0, keepdims=True),
                          jnp.sum(hf * hf, axis=0, keepdims=True)], axis=0)
    st_ref[...] = st.reshape(st_ref.shape)


# --------------------------------------------------------------------------
# Kernel 1: 1x1 conv (compress), row-tiled matmul + BN1 partial stats.
# --------------------------------------------------------------------------
def _conv1_kernel(x_ref, w_ref, h_ref, st_ref):
    h = jnp.dot(x_ref[...].astype(MXU_DTYPE), w_ref[...],
                preferred_element_type=jnp.float32)
    _store_act_and_stats(h, h_ref, st_ref)


# --------------------------------------------------------------------------
# Kernel 3: fused BN2+ReLU -> 1x1 conv (expand) + BN3 partial stats.
# --------------------------------------------------------------------------
def _conv3_kernel(h2_ref, sc_ref, sh_ref, w_ref, h_ref, st_ref):
    a = jnp.maximum(h2_ref[...].astype(jnp.float32) * sc_ref[...] + sh_ref[...],
                    0.0)
    h = jnp.dot(a.astype(MXU_DTYPE), w_ref[...],
                preferred_element_type=jnp.float32)
    _store_act_and_stats(h, h_ref, st_ref)


def _pointwise_conv(x2d, w, scale=None, shift=None):
    m, cin = x2d.shape
    cout = w.shape[1]
    tm = _row_tile(m, cin * x2d.dtype.itemsize + cout * 2)
    nt = m // tm
    if scale is None:
        kernel = _conv1_kernel
        args = (x2d, w)
        in_specs = [pl.BlockSpec((tm, cin), lambda i: (i, 0)),
                    pl.BlockSpec((cin, cout), lambda i: (0, 0))]
    else:
        kernel = _conv3_kernel
        args = (x2d, scale, shift, w)
        in_specs = [pl.BlockSpec((tm, cin), lambda i: (i, 0)),
                    pl.BlockSpec((1, cin), lambda i: (0, 0)),
                    pl.BlockSpec((1, cin), lambda i: (0, 0)),
                    pl.BlockSpec((cin, cout), lambda i: (0, 0))]
    h, st = pl.pallas_call(
        kernel,
        out_shape=(jax.ShapeDtypeStruct((m, cout), MXU_DTYPE),
                   jax.ShapeDtypeStruct((nt, 2, cout), jnp.float32)),
        grid=(nt,),
        in_specs=in_specs,
        out_specs=(pl.BlockSpec((tm, cout), lambda i: (i, 0)),
                   pl.BlockSpec((1, 2, cout), lambda i: (i, 0, 0))),
        compiler_params=pltpu.CompilerParams(
            dimension_semantics=("parallel",)),     # blocked stats -> parallel
    )(*args)
    return h, jnp.sum(st, axis=0)


# --------------------------------------------------------------------------
# Kernel 2: fused BN1+ReLU -> 3x3 conv, H-tiled with a 1-row halo,
#           bf16 im2col, single K = 9*C matmul + BN2 partial stats.
# --------------------------------------------------------------------------
def _conv3x3_kernel(h1_ref, sc_ref, sh_ref, w_ref, h2_ref, st_ref, pad_ref):
    n = pl.program_id(0)
    t = pl.program_id(1)
    nh = pl.num_programs(1)
    _, H, W, C = h1_ref.shape
    TH = h2_ref.shape[1]
    sc = sc_ref[...]
    sh = sh_ref[...]

    def bn_relu(rows):                              # (r, W, C) bf16 -> bf16
        v = rows.astype(jnp.float32)
        return jnp.maximum(v * sc + sh, 0.0).astype(MXU_DTYPE)

    # One-time zeroing of the left/right column halo: the scratch persists
    # across the (sequential, "arbitrary") grid and nothing overwrites it.
    @pl.when((n == 0) & (t == 0))
    def _():
        zc = jnp.zeros((TH + 2, 1, C), MXU_DTYPE)
        pad_ref[:, 0:1, :] = zc
        pad_ref[:, W + 1:W + 2, :] = zc

    row0 = t * TH
    # Interior rows (fused BN1 + ReLU, written directly in bf16).
    pad_ref[1:TH + 1, 1:W + 1, :] = bn_relu(h1_ref[0, pl.ds(row0, TH)])

    # Top halo row: zero at the image top, otherwise the previous image row.
    @pl.when(t == 0)
    def _():
        pad_ref[0:1, 1:W + 1, :] = jnp.zeros((1, W, C), MXU_DTYPE)

    @pl.when(t != 0)
    def _():
        r = jnp.maximum(row0 - 1, 0)
        pad_ref[0:1, 1:W + 1, :] = bn_relu(h1_ref[0, pl.ds(r, 1)])

    # Bottom halo row.
    @pl.when(t == nh - 1)
    def _():
        pad_ref[TH + 1:TH + 2, 1:W + 1, :] = jnp.zeros((1, W, C), MXU_DTYPE)

    @pl.when(t != nh - 1)
    def _():
        r = jnp.minimum(row0 + TH, H - 1)
        pad_ref[TH + 1:TH + 2, 1:W + 1, :] = bn_relu(h1_ref[0, pl.ds(r, 1)])

    # im2col in bf16: 9 shifted windows concatenated along channels -> one MXU
    # matmul with contraction depth K = 9*C.
    # TODO(synk): evaluate 3 accumulating K=3*C matmuls to skip the lhs concat.
    cols = []
    for di in range(3):
        for dj in range(3):
            cols.append(pad_ref[di:di + TH, dj:dj + W, :].reshape(TH * W, C))
    lhs = jnp.concatenate(cols, axis=-1)                    # (TH*W, 9*C) bf16
    h2 = jnp.dot(lhs, w_ref[...], preferred_element_type=jnp.float32)
    hq = h2.astype(MXU_DTYPE)
    h2_ref[...] = hq.reshape(1, TH, W, C)
    hf = hq.astype(jnp.float32)
    st = jnp.concatenate([jnp.sum(hf, axis=0, keepdims=True),
                          jnp.sum(hf * hf, axis=0, keepdims=True)], axis=0)
    st_ref[...] = st.reshape(1, 1, 2, C)


def _conv3x3(h1_4d, scale, shift, w2_flat):
    n, H, W, c = h1_4d.shape
    th = _h_tile(H, W, c)
    nh = H // th
    # VMEM budget: double-buffered blocks + bf16 pad scratch + im2col temps.
    vmem = (2 * (H * W * c * 2 + th * W * c * 2 + 9 * c * c * 2 + 4 * c * 4)
            + (th + 2) * (W + 2) * c * 2
            + 3 * th * W * 9 * c * 2 + th * W * c * 4 + (2 << 20))
    h2, st = pl.pallas_call(
        _conv3x3_kernel,
        out_shape=(jax.ShapeDtypeStruct((n, H, W, c), MXU_DTYPE),
                   jax.ShapeDtypeStruct((n, nh, 2, c), jnp.float32)),
        grid=(n, nh),
        in_specs=[pl.BlockSpec((1, H, W, c), lambda i, j: (i, 0, 0, 0)),
                  pl.BlockSpec((1, c), lambda i, j: (0, 0)),
                  pl.BlockSpec((1, c), lambda i, j: (0, 0)),
                  pl.BlockSpec((9 * c, c), lambda i, j: (0, 0))],
        out_specs=(pl.BlockSpec((1, th, W, c), lambda i, j: (i, j, 0, 0)),
                   pl.BlockSpec((1, 1, 2, c), lambda i, j: (i, j, 0, 0))),
        scratch_shapes=[pltpu.VMEM((th + 2, W + 2, c), MXU_DTYPE)],
        compiler_params=pltpu.CompilerParams(
            # Sequential grid so the column halo is zeroed exactly once.
            dimension_semantics=("arbitrary", "arbitrary"),
            vmem_limit_bytes=int(min(max(vmem, 16 << 20), 48 << 20))),
    )(h1_4d, scale, shift, w2_flat)
    return h2, jnp.sum(st, axis=(0, 1))


# --------------------------------------------------------------------------
# Kernel 4: BN3 (fused scale/shift) + residual add (f32) + ReLU.
# --------------------------------------------------------------------------
def _residual_kernel(h3_ref, x_ref, sc_ref, sh_ref, o_ref):
    o_ref[...] = jnp.maximum(
        h3_ref[...].astype(jnp.float32) * sc_ref[...] + sh_ref[...] + x_ref[...],
        0.0).astype(o_ref.dtype)


def _bn_residual_relu(h3, x2d, scale, shift):
    m, c = h3.shape
    tm = _row_tile(m, c * (2 + 4 + 4))
    return pl.pallas_call(
        _residual_kernel,
        out_shape=jax.ShapeDtypeStruct((m, c), x2d.dtype),
        grid=(m // tm,),
        in_specs=[pl.BlockSpec((tm, c), lambda i: (i, 0)),
                  pl.BlockSpec((tm, c), lambda i: (i, 0)),
                  pl.BlockSpec((1, c), lambda i: (0, 0)),
                  pl.BlockSpec((1, c), lambda i: (0, 0))],
        out_specs=pl.BlockSpec((tm, c), lambda i: (i, 0)),
        compiler_params=pltpu.CompilerParams(
            dimension_semantics=("parallel",)),
    )(h3, x2d, scale, shift)


def _bn_affine(stats, gamma, beta, count):
    """Fold batch-norm (batch statistics, biased variance) into scale/shift."""
    # TODO(synk): E[x^2]-E[x]^2 can cancel for huge N*H*W with |mean|>>std;
    # switch to mean-subtracted per-tile partials if that regime matters.
    mean = stats[0] / count
    var = jnp.maximum(stats[1] / count - mean * mean, 0.0)
    scale = gamma * lax.rsqrt(var + EPS)
    shift = beta - scale * mean
    return scale.reshape(1, -1), shift.reshape(1, -1)


@jax.jit
def bottleneck_forward(x_nchw, w1_t, w2_t, w3_t, g1, b1, g2, b2, g3, b3):
    """x_nchw: (N, Cin, H, W).  Conv weights in PyTorch (O, I, kh, kw) layout."""
    n, cin, H, W = x_nchw.shape
    width = w1_t.shape[0]
    cout = w3_t.shape[0]
    m = n * H * W
    cin_p = _round_up(cin, LANES)
    width_p = _round_up(width, LANES)
    cout_p = _round_up(cout, LANES)    # == cin_p (identity add, no downsample)

    # NCHW -> NHWC rows; zero-pad channels to 128 lanes so every kernel's last
    # dim is lane-dense and the MXU is fully used.
    x = jnp.transpose(x_nchw, (0, 2, 3, 1)).reshape(m, cin)
    x2d = _pad_last(x, cin_p)                       # f32 residual path

    # Weights in (in, out) matmul layout, channel-padded, bf16 for the MXU.
    w1 = jnp.pad(jnp.transpose(w1_t[:, :, 0, 0], (1, 0)),
                 ((0, cin_p - cin), (0, width_p - width))).astype(MXU_DTYPE)
    w2 = jnp.pad(jnp.transpose(w2_t, (2, 3, 1, 0)),
                 ((0, 0), (0, 0), (0, width_p - width), (0, width_p - width)))
    w2 = w2.reshape(9 * width_p, width_p).astype(MXU_DTYPE)
    w3 = jnp.pad(jnp.transpose(w3_t[:, :, 0, 0], (1, 0)),
                 ((0, width_p - width), (0, cout_p - cout))).astype(MXU_DTYPE)

    g1p, b1p = _pad_last(g1, width_p), _pad_last(b1, width_p)
    g2p, b2p = _pad_last(g2, width_p), _pad_last(b2, width_p)
    g3p, b3p = _pad_last(g3, cout_p), _pad_last(b3, cout_p)

    # Stage 1: conv1x1 compress + BN1 batch stats (bf16 activations in HBM).
    h1, st1 = _pointwise_conv(x2d, w1)
    sc1, sh1 = _bn_affine(st1, g1p, b1p, m)

    # Stage 2: BN1+ReLU fused into the H-tiled 3x3 conv + BN2 stats.
    h2, st2 = _conv3x3(h1.reshape(n, H, W, width_p), sc1, sh1, w2)
    sc2, sh2 = _bn_affine(st2, g2p, b2p, m)

    # Stage 3: BN2+ReLU fused into conv1x1 expand + BN3 stats.
    h3, st3 = _pointwise_conv(h2.reshape(m, width_p), w3, sc2, sh2)
    sc3, sh3 = _bn_affine(st3, g3p, b3p, m)

    # Stage 4: BN3 + residual add (f32) + ReLU.
    out2d = _bn_residual_relu(h3, x2d, sc3, sh3)
    out = out2d.reshape(n, H, W, cout_p)[:, :, :, :cout]
    return jnp.transpose(out, (0, 3, 1, 2))          # NHWC -> NCHW


# ---------------- plain-JAX reference (for correctness check) ----------------
def _bn_ref(h_nchw, gamma, beta):
    mean = jnp.mean(h_nchw, axis=(0, 2, 3), keepdims=True)
    var = jnp.mean((h_nchw - mean) ** 2, axis=(0, 2, 3), keepdims=True)
    g = gamma.reshape(1, -1, 1, 1)
    b = beta.reshape(1, -1, 1, 1)
    return (h_nchw - mean) * lax.rsqrt(var + EPS) * g + b


def reference_forward(x, w1_t, w2_t, w3_t, g1, b1, g2, b2, g3, b3,
                      conv_dtype=jnp.float32, quantize_acts=False):
    dn = ("NCHW", "OIHW", "NCHW")

    def conv(h, w, pad):
        return lax.conv_general_dilated(
            h.astype(conv_dtype), w.astype(conv_dtype), (1, 1), pad,
            dimension_numbers=dn, preferred_element_type=jnp.float32)

    def q(h):  # mimic the kernel's bf16 inter-stage activations
        return h.astype(jnp.bfloat16).astype(jnp.float32) if quantize_acts else h

    h = jnp.maximum(_bn_ref(q(conv(x, w1_t, "VALID")), g1, b1), 0.0)
    h = jnp.maximum(_bn_ref(q(conv(h, w2_t, [(1, 1), (1, 1)])), g2, b2), 0.0)
    h = _bn_ref(q(conv(h, w3_t, "VALID")), g3, b3)
    return jnp.maximum(h + x, 0.0)


if __name__ == "__main__":
    # Small shapes: outchannel=8 -> width=8, expansion=4 -> inchannel=32.
    N, H, W = 2, 8, 8
    outchannel = 8
    width = outchannel            # base_width=64, groups=1
    Cin = outchannel * 4          # = expansion * outchannel (no downsample)
    Cout = outchannel * 4

    key = jax.random.PRNGKey(0)
    ks = jax.random.split(key, 8)
    x = jax.random.normal(ks[0], (N, Cin, H, W), jnp.float32)

    # Conv weights in PyTorch (O, I, kh, kw) layout, deterministic init.
    w1_t = jax.random.normal(ks[1], (width, Cin, 1, 1), jnp.float32) * 0.1
    w2_t = jax.random.normal(ks[2], (width, width, 3, 3), jnp.float32) * 0.1
    w3_t = jax.random.normal(ks[3], (Cout, width, 1, 1), jnp.float32) * 0.1

    # BN affine parameters.
    g1 = 1.0 + 0.1 * jax.random.normal(ks[4], (width,), jnp.float32)
    b1 = 0.1 * jax.random.normal(ks[5], (width,), jnp.float32)
    g2 = 1.0 + 0.1 * jax.random.normal(ks[6], (width,), jnp.float32)
    b2 = 0.1 * jax.random.normal(ks[7], (width,), jnp.float32)
    g3 = jnp.ones((Cout,), jnp.float32)
    b3 = jnp.zeros((Cout,), jnp.float32)

    out = bottleneck_forward(x, w1_t, w2_t, w3_t, g1, b1, g2, b2, g3, b3)
    out = jax.block_until_ready(out)
    assert out.shape == (N, Cout, H, W)

    # Tight check against a reference with identical bf16 quantization of the
    # conv operands and the inter-stage activations (f32 accumulation) ...
    ref_q = reference_forward(x, w1_t, w2_t, w3_t, g1, b1, g2, b2, g3, b3,
                              conv_dtype=jnp.bfloat16, quantize_acts=True)
    assert jnp.allclose(out, ref_q, atol=2e-2, rtol=2e-2), float(
        jnp.max(jnp.abs(out - ref_q)))

    # ... and a loose sanity check against the pure-f32 reference (the only
    # difference is bf16 rounding of MXU operands / stored activations).
    ref_f32 = reference_forward(x, w1_t, w2_t, w3_t, g1, b1, g2, b2, g3, b3,
                                conv_dtype=jnp.float32, quantize_acts=False)
    assert jnp.allclose(out, ref_f32, atol=1e-1, rtol=1e-1), float(
        jnp.max(jnp.abs(out - ref_f32)))

    print("KERNEL_OK")
</pallas_src>

<mosaic_0001>
module attributes {stable_mosaic.version = 11 : i64} {
  func.func @_conv1_kernel(%arg0: i32, %arg1: memref<32x128xf32, #tpu.memory_space<vmem>>, %arg2: memref<128x128xbf16, #tpu.memory_space<vmem>>, %arg3: memref<32x128xbf16, #tpu.memory_space<vmem>>, %arg4: memref<1x2x128xf32, #tpu.memory_space<vmem>>) attributes {dimension_semantics = [#tpu.dimension_semantics<parallel>], iteration_bounds = array<i64: 4>, scalar_prefetch = 0 : i64, scratch_operands = 0 : i64, tpu.core_type = #tpu.core_type<tc>, window_params = [{transform_indices = @transform_0, window_bounds = array<i64: 32, 128>}, {pipeline_mode = #tpu.pipeline_mode<synchronous>, transform_indices = @transform_1, window_bounds = array<i64: 128, 128>}, {transform_indices = @transform_2, window_bounds = array<i64: 32, 128>}, {transform_indices = @transform_3, window_bounds = array<i64: 1, 2, 128>}]} {
    %c0 = arith.constant 0 : index
    %c0_0 = arith.constant 0 : index
    %0 = vector.load %arg1[%c0, %c0_0] : memref<32x128xf32, #tpu.memory_space<vmem>>, vector<32x128xf32>
    %1 = arith.truncf %0 : vector<32x128xf32> to vector<32x128xbf16>
    %c0_1 = arith.constant 0 : index
    %c0_2 = arith.constant 0 : index
    %2 = vector.load %arg2[%c0_1, %c0_2] : memref<128x128xbf16, #tpu.memory_space<vmem>>, vector<128x128xbf16>
    %cst = arith.constant dense<0.000000e+00> : vector<32x128xf32>
    %3 = tpu.matmul %1, %2, %cst {dimension_numbers = #tpu.dot_dimension_numbers<[1], [0], [0], [1], [0, 0, 1, 1], [], []>} : vector<32x128xbf16>, vector<128x128xbf16>, vector<32x128xf32> -> vector<32x128xf32>
    %4 = arith.truncf %3 : vector<32x128xf32> to vector<32x128xbf16>
    %c0_3 = arith.constant 0 : index
    %c0_4 = arith.constant 0 : index
    %5 = vector.load %arg3[%c0_3, %c0_4] : memref<32x128xbf16, #tpu.memory_space<vmem>>, vector<32x128xbf16>
    tpu.vector_store %arg3[%c0_3, %c0_4], %4 {strides = array<i32>} : memref<32x128xbf16, #tpu.memory_space<vmem>>, vector<32x128xbf16>,
    %6 = arith.extf %4 : vector<32x128xbf16> to vector<32x128xf32>
    %cst_5 = arith.constant dense<0.000000e+00> : vector<128xf32>
    %7 = vector.multi_reduction <add>, %6, %cst_5 [0] : vector<32x128xf32> to vector<128xf32>
    %8 = vector.shape_cast %7 : vector<128xf32> to vector<1x128xf32>
    %9 = arith.mulf %6, %6 : vector<32x128xf32>
    %cst_6 = arith.constant dense<0.000000e+00> : vector<128xf32>
    %10 = vector.multi_reduction <add>, %9, %cst_6 [0] : vector<32x128xf32> to vector<128xf32>
    %11 = vector.shape_cast %10 : vector<128xf32> to vector<1x128xf32>
    %12 = tpu.concatenate %8, %11 in 0 : vector<1x128xf32>, vector<1x128xf32> -> vector<2x128xf32>
    %13 = vector.shape_cast %12 : vector<2x128xf32> to vector<1x2x128xf32>
    %c0_7 = arith.constant 0 : index
    %c0_8 = arith.constant 0 : index
    %c0_9 = arith.constant 0 : index
    %14 = vector.load %arg4[%c0_7, %c0_8, %c0_9] : memref<1x2x128xf32, #tpu.memory_space<vmem>>, vector<1x2x128xf32>
    tpu.vector_store %arg4[%c0_7, %c0_8, %c0_9], %13 {strides = array<i32>} : memref<1x2x128xf32, #tpu.memory_space<vmem>>, vector<1x2x128xf32>,
    return
  }
  func.func @transform_0(%arg0: i32) -> (i32, i32) {
    %c0_i32 = arith.constant 0 : i32
    %c0_i32_0 = arith.constant 0 : i32
    return %arg0, %c0_i32 : i32, i32
  }
  func.func @transform_1(%arg0: i32) -> (i32, i32) {
    %c0_i32 = arith.constant 0 : i32
    %c0_i32_0 = arith.constant 0 : i32
    %c0_i32_1 = arith.constant 0 : i32
    return %c0_i32, %c0_i32_0 : i32, i32
  }
  func.func @transform_2(%arg0: i32) -> (i32, i32) {
    %c0_i32 = arith.constant 0 : i32
    %c0_i32_0 = arith.constant 0 : i32
    return %arg0, %c0_i32 : i32, i32
  }
  func.func @transform_3(%arg0: i32) -> (i32, i32, i32) {
    %c0_i32 = arith.constant 0 : i32
    %c0_i32_0 = arith.constant 0 : i32
    %c0_i32_1 = arith.constant 0 : i32
    return %arg0, %c0_i32, %c0_i32_0 : i32, i32, i32
  }
}

module attributes {stable_mosaic.version = 11 : i64} {
  func.func @_conv3_kernel(%arg0: i32, %arg1: memref<32x128xbf16, #tpu.memory_space<vmem>>, %arg2: memref<1x128xf32, #tpu.memory_space<vmem>>, %arg3: memref<1x128xf32, #tpu.memory_space<vmem>>, %arg4: memref<128x128xbf16, #tpu.memory_space<vmem>>, %arg5: memref<32x128xbf16, #tpu.memory_space<vmem>>, %arg6: memref<1x2x128xf32, #tpu.memory_space<vmem>>) attributes {dimension_semantics = [#tpu.dimension_semantics<parallel>], iteration_bounds = array<i64: 4>, scalar_prefetch = 0 : i64, scratch_operands = 0 : i64, tpu.core_type = #tpu.core_type<tc>, window_params = [{transform_indices = @transform_0, window_bounds = array<i64: 32, 128>}, {pipeline_mode = #tpu.pipeline_mode<synchronous>, transform_indices = @transform_1, window_bounds = array<i64: 1, 128>}, {pipeline_mode = #tpu.pipeline_mode<synchronous>, transform_indices = @transform_2, window_bounds = array<i64: 1, 128>}, {pipeline_mode = #tpu.pipeline_mode<synchronous>, transform_indices = @transform_3, window_bounds = array<i64: 128, 128>}, {transform_indices = @transform_4, window_bounds = array<i64: 32, 128>}, {transform_indices = @transform_5, window_bounds = array<i64: 1, 2, 128>}]} {
    %c0 = arith.constant 0 : index
    %c0_0 = arith.constant 0 : index
    %0 = vector.load %arg1[%c0, %c0_0] : memref<32x128xbf16, #tpu.memory_space<vmem>>, vector<32x128xbf16>
    %1 = arith.extf %0 : vector<32x128xbf16> to vector<32x128xf32>
    %c0_1 = arith.constant 0 : index
    %c0_2 = arith.constant 0 : index
    %2 = vector.load %arg2[%c0_1, %c0_2] : memref<1x128xf32, #tpu.memory_space<vmem>>, vector<1x128xf32>
    %3 = vector.broadcast %2 : vector<1x128xf32> to vector<32x128xf32>
    %4 = arith.mulf %1, %3 : vector<32x128xf32>
    %c0_3 = arith.constant 0 : index
    %c0_4 = arith.constant 0 : index
    %5 = vector.load %arg3[%c0_3, %c0_4] : memref<1x128xf32, #tpu.memory_space<vmem>>, vector<1x128xf32>
    %6 = vector.broadcast %5 : vector<1x128xf32> to vector<32x128xf32>
    %7 = arith.addf %4, %6 : vector<32x128xf32>
    %cst = arith.constant 0.000000e+00 : f32
    %8 = vector.broadcast %cst : f32 to vector<32x128xf32>
    %9 = arith.maximumf %7, %8 : vector<32x128xf32>
    %10 = arith.truncf %9 : vector<32x128xf32> to vector<32x128xbf16>
    %c0_5 = arith.constant 0 : index
    %c0_6 = arith.constant 0 : index
    %11 = vector.load %arg4[%c0_5, %c0_6] : memref<128x128xbf16, #tpu.memory_space<vmem>>, vector<128x128xbf16>
    %cst_7 = arith.constant dense<0.000000e+00> : vector<32x128xf32>
    %12 = tpu.matmul %10, %11, %cst_7 {dimension_numbers = #tpu.dot_dimension_numbers<[1], [0], [0], [1], [0, 0, 1, 1], [], []>} : vector<32x128xbf16>, vector<128x128xbf16>, vector<32x128xf32> -> vector<32x128xf32>
    %13 = arith.truncf %12 : vector<32x128xf32> to vector<32x128xbf16>
    %c0_8 = arith.constant 0 : index
    %c0_9 = arith.constant 0 : index
    %14 = vector.load %arg5[%c0_8, %c0_9] : memref<32x128xbf16, #tpu.memory_space<vmem>>, vector<32x128xbf16>
    tpu.vector_store %arg5[%c0_8, %c0_9], %13 {strides = array<i32>} : memref<32x128xbf16, #tpu.memory_space<vmem>>, vector<32x128xbf16>,
    %15 = arith.extf %13 : vector<32x128xbf16> to vector<32x128xf32>
    %cst_10 = arith.constant dense<0.000000e+00> : vector<128xf32>
    %16 = vector.multi_reduction <add>, %15, %cst_10 [0] : vector<32x128xf32> to vector<128xf32>
    %17 = vector.shape_cast %16 : vector<128xf32> to vector<1x128xf32>
    %18 = arith.mulf %15, %15 : vector<32x128xf32>
    %cst_11 = arith.constant dense<0.000000e+00> : vector<128xf32>
    %19 = vector.multi_reduction <add>, %18, %cst_11 [0] : vector<32x128xf32> to vector<128xf32>
    %20 = vector.shape_cast %19 : vector<128xf32> to vector<1x128xf32>
    %21 = tpu.concatenate %17, %20 in 0 : vector<1x128xf32>, vector<1x128xf32> -> vector<2x128xf32>
    %22 = vector.shape_cast %21 : vector<2x128xf32> to vector<1x2x128xf32>
    %c0_12 = arith.constant 0 : index
    %c0_13 = arith.constant 0 : index
    %c0_14 = arith.constant 0 : index
    %23 = vector.load %arg6[%c0_12, %c0_13, %c0_14] : memref<1x2x128xf32, #tpu.memory_space<vmem>>, vector<1x2x128xf32>
    tpu.vector_store %arg6[%c0_12, %c0_13, %c0_14], %22 {strides = array<i32>} : memref<1x2x128xf32, #tpu.memory_space<vmem>>, vector<1x2x128xf32>,
    return
  }
  func.func @transform_0(%arg0: i32) -> (i32, i32) {
    %c0_i32 = arith.constant 0 : i32
    %c0_i32_0 = arith.constant 0 : i32
    return %arg0, %c0_i32 : i32, i32
  }
  func.func @transform_1(%arg0: i32) -> (i32, i32) {
    %c0_i32 = arith.constant 0 : i32
    %c0_i32_0 = arith.constant 0 : i32
    %c0_i32_1 = arith.constant 0 : i32
    return %c0_i32, %c0_i32_0 : i32, i32
  }
  func.func @transform_2(%arg0: i32) -> (i32, i32) {
    %c0_i32 = arith.constant 0 : i32
    %c0_i32_0 = arith.constant 0 : i32
    %c0_i32_1 = arith.constant 0 : i32
    return %c0_i32, %c0_i32_0 : i32, i32
  }
  func.func @transform_3(%arg0: i32) -> (i32, i32) {
    %c0_i32 = arith.constant 0 : i32
    %c0_i32_0 = arith.constant 0 : i32
    %c0_i32_1 = arith.constant 0 : i32
    return %c0_i32, %c0_i32_0 : i32, i32
  }
  func.func @transform_4(%arg0: i32) -> (i32, i32) {
    %c0_i32 = arith.constant 0 : i32
    %c0_i32_0 = arith.constant 0 : i32
    return %arg0, %c0_i32 : i32, i32
  }
  func.func @transform_5(%arg0: i32) -> (i32, i32, i32) {
    %c0_i32 = arith.constant 0 : i32
    %c0_i32_0 = arith.constant 0 : i32
    %c0_i32_1 = arith.constant 0 : i32
    return %arg0, %c0_i32, %c0_i32_0 : i32, i32, i32
  }
}

module attributes {stable_mosaic.version = 11 : i64} {
  func.func @_conv3x3_kernel(%arg0: i32, %arg1: i32, %arg2: memref<1x8x8x128xbf16, #tpu.memory_space<vmem>>, %arg3: memref<1x128xf32, #tpu.memory_space<vmem>>, %arg4: memref<1x128xf32, #tpu.memory_space<vmem>>, %arg5: memref<1152x128xbf16, #tpu.memory_space<vmem>>, %arg6: memref<1x4x8x128xbf16, #tpu.memory_space<vmem>>, %arg7: memref<1x1x2x128xf32, #tpu.memory_space<vmem>>, %arg8: memref<6x10x128xbf16, #tpu.memory_space<vmem>>) attributes {dimension_semantics = [#tpu.dimension_semantics<arbitrary>, #tpu.dimension_semantics<arbitrary>], iteration_bounds = array<i64: 2, 2>, scalar_prefetch = 0 : i64, scratch_operands = 1 : i64, tpu.core_type = #tpu.core_type<tc>, window_params = [{transform_indices = @transform_0, window_bounds = array<i64: 1, 8, 8, 128>}, {pipeline_mode = #tpu.pipeline_mode<synchronous>, transform_indices = @transform_1, window_bounds = array<i64: 1, 128>}, {pipeline_mode = #tpu.pipeline_mode<synchronous>, transform_indices = @transform_2, window_bounds = array<i64: 1, 128>}, {pipeline_mode = #tpu.pipeline_mode<synchronous>, transform_indices = @transform_3, window_bounds = array<i64: 1152, 128>}, {transform_indices = @transform_4, window_bounds = array<i64: 1, 4, 8, 128>}, {transform_indices = @transform_5, window_bounds = array<i64: 1, 1, 2, 128>}]} {
    %c0 = arith.constant 0 : index
    %c0_0 = arith.constant 0 : index
    %0 = vector.load %arg3[%c0, %c0_0] : memref<1x128xf32, #tpu.memory_space<vmem>>, vector<1x128xf32>
    %c0_1 = arith.constant 0 : index
    %c0_2 = arith.constant 0 : index
    %1 = vector.load %arg4[%c0_1, %c0_2] : memref<1x128xf32, #tpu.memory_space<vmem>>, vector<1x128xf32>
    %c0_i32 = arith.constant 0 : i32
    %2 = arith.cmpi eq, %arg0, %c0_i32 : i32
    %c0_i32_3 = arith.constant 0 : i32
    %3 = arith.cmpi eq, %arg1, %c0_i32_3 : i32
    %4 = arith.andi %2, %3 : i1
    %5 = arith.extui %4 : i1 to i32
    %c0_i32_4 = arith.constant 0 : i32
    %6 = arith.cmpi ne, %5, %c0_i32_4 : i32
    scf.if %6 {
      %cst_56 = arith.constant 0.000000e+00 : bf16
      %67 = vector.broadcast %cst_56 : bf16 to vector<6x1x128xbf16>
      %c0_57 = arith.constant 0 : index
      %c0_58 = arith.constant 0 : index
      %c0_59 = arith.constant 0 : index
      %68 = vector.load %arg8[%c0_57, %c0_58, %c0_59] : memref<6x10x128xbf16, #tpu.memory_space<vmem>>, vector<6x1x128xbf16>
      tpu.vector_store %arg8[%c0_57, %c0_58, %c0_59], %67 {strides = array<i32>} : memref<6x10x128xbf16, #tpu.memory_space<vmem>>, vector<6x1x128xbf16>,
      %c0_60 = arith.constant 0 : index
      %c9 = arith.constant 9 : index
      %c0_61 = arith.constant 0 : index
      %69 = vector.load %arg8[%c0_60, %c9, %c0_61] : memref<6x10x128xbf16, #tpu.memory_space<vmem>>, vector<6x1x128xbf16>
      tpu.vector_store %arg8[%c0_60, %c9, %c0_61], %67 {strides = array<i32>} : memref<6x10x128xbf16, #tpu.memory_space<vmem>>, vector<6x1x128xbf16>,
    } else {
    }
    %c4_i32 = arith.constant 4 : i32
    %7 = arith.muli %arg1, %c4_i32 : i32
    %c0_5 = arith.constant 0 : index
    %8 = arith.index_cast %7 : i32 to index
    %c0_6 = arith.constant 0 : index
    %c0_7 = arith.constant 0 : index
    %9 = vector.load %arg2[%c0_5, %8, %c0_6, %c0_7] : memref<1x8x8x128xbf16, #tpu.memory_space<vmem>>, vector<1x4x8x128xbf16>
    %10 = vector.shape_cast %9 : vector<1x4x8x128xbf16> to vector<4x8x128xbf16>
    %11 = arith.extf %10 : vector<4x8x128xbf16> to vector<4x8x128xf32>
    %12 = vector.shape_cast %0 : vector<1x128xf32> to vector<1x1x128xf32>
    %13 = vector.broadcast %12 : vector<1x1x128xf32> to vector<4x8x128xf32>
    %14 = arith.mulf %11, %13 : vector<4x8x128xf32>
    %15 = vector.shape_cast %1 : vector<1x128xf32> to vector<1x1x128xf32>
    %16 = vector.broadcast %15 : vector<1x1x128xf32> to vector<4x8x128xf32>
    %17 = arith.addf %14, %16 : vector<4x8x128xf32>
    %cst = arith.constant 0.000000e+00 : f32
    %18 = vector.broadcast %cst : f32 to vector<4x8x128xf32>
    %19 = arith.maximumf %17, %18 : vector<4x8x128xf32>
    %20 = arith.truncf %19 : vector<4x8x128xf32> to vector<4x8x128xbf16>
    %c1 = arith.constant 1 : index
    %c1_8 = arith.constant 1 : index
    %c0_9 = arith.constant 0 : index
    %21 = vector.load %arg8[%c1, %c1_8, %c0_9] : memref<6x10x128xbf16, #tpu.memory_space<vmem>>, vector<4x8x128xbf16>
    tpu.vector_store %arg8[%c1, %c1_8, %c0_9], %20 {strides = array<i32>} : memref<6x10x128xbf16, #tpu.memory_space<vmem>>, vector<4x8x128xbf16>,
    %c0_i32_10 = arith.constant 0 : i32
    %22 = arith.cmpi eq, %arg1, %c0_i32_10 : i32
    %23 = arith.extui %22 : i1 to i32
    %c0_i32_11 = arith.constant 0 : i32
    %24 = arith.cmpi ne, %23, %c0_i32_11 : i32
    scf.if %24 {
      %cst_56 = arith.constant 0.000000e+00 : bf16
      %67 = vector.broadcast %cst_56 : bf16 to vector<1x8x128xbf16>
      %c0_57 = arith.constant 0 : index
      %c1_58 = arith.constant 1 : index
      %c0_59 = arith.constant 0 : index
      %68 = vector.load %arg8[%c0_57, %c1_58, %c0_59] : memref<6x10x128xbf16, #tpu.memory_space<vmem>>, vector<1x8x128xbf16>
      tpu.vector_store %arg8[%c0_57, %c1_58, %c0_59], %67 {strides = array<i32>} : memref<6x10x128xbf16, #tpu.memory_space<vmem>>, vector<1x8x128xbf16>,
    } else {
    }
    %c0_i32_12 = arith.constant 0 : i32
    %25 = arith.cmpi ne, %arg1, %c0_i32_12 : i32
    %26 = arith.extui %25 : i1 to i32
    %c0_i32_13 = arith.constant 0 : i32
    %27 = arith.cmpi ne, %26, %c0_i32_13 : i32
    scf.if %27 {
      %c1_i32_56 = arith.constant 1 : i32
      %67 = arith.subi %7, %c1_i32_56 : i32
      %c0_i32_57 = arith.constant 0 : i32
      %68 = arith.maxsi %67, %c0_i32_57 : i32
      %c0_58 = arith.constant 0 : index
      %69 = arith.index_cast %68 : i32 to index
      %c0_59 = arith.constant 0 : index
      %c0_60 = arith.constant 0 : index
      %70 = vector.load %arg2[%c0_58, %69, %c0_59, %c0_60] : memref<1x8x8x128xbf16, #tpu.memory_space<vmem>>, vector<1x1x8x128xbf16>
      %71 = vector.shape_cast %70 : vector<1x1x8x128xbf16> to vector<1x8x128xbf16>
      %72 = arith.extf %71 : vector<1x8x128xbf16> to vector<1x8x128xf32>
      %73 = vector.shape_cast %0 : vector<1x128xf32> to vector<1x1x128xf32>
      %74 = vector.broadcast %73 : vector<1x1x128xf32> to vector<1x8x128xf32>
      %75 = arith.mulf %72, %74 : vector<1x8x128xf32>
      %76 = vector.shape_cast %1 : vector<1x128xf32> to vector<1x1x128xf32>
      %77 = vector.broadcast %76 : vector<1x1x128xf32> to vector<1x8x128xf32>
      %78 = arith.addf %75, %77 : vector<1x8x128xf32>
      %cst_61 = arith.constant 0.000000e+00 : f32
      %79 = vector.broadcast %cst_61 : f32 to vector<1x8x128xf32>
      %80 = arith.maximumf %78, %79 : vector<1x8x128xf32>
      %81 = arith.truncf %80 : vector<1x8x128xf32> to vector<1x8x128xbf16>
      %c0_62 = arith.constant 0 : index
      %c1_63 = arith.constant 1 : index
      %c0_64 = arith.constant 0 : index
      %82 = vector.load %arg8[%c0_62, %c1_63, %c0_64] : memref<6x10x128xbf16, #tpu.memory_space<vmem>>, vector<1x8x128xbf16>
      tpu.vector_store %arg8[%c0_62, %c1_63, %c0_64], %81 {strides = array<i32>} : memref<6x10x128xbf16, #tpu.memory_space<vmem>>, vector<1x8x128xbf16>,
    } else {
    }
    %c1_i32 = arith.constant 1 : i32
    %28 = arith.cmpi eq, %arg1, %c1_i32 : i32
    %29 = arith.extui %28 : i1 to i32
    %c0_i32_14 = arith.constant 0 : i32
    %30 = arith.cmpi ne, %29, %c0_i32_14 : i32
    scf.if %30 {
      %cst_56 = arith.constant 0.000000e+00 : bf16
      %67 = vector.broadcast %cst_56 : bf16 to vector<1x8x128xbf16>
      %c5 = arith.constant 5 : index
      %c1_57 = arith.constant 1 : index
      %c0_58 = arith.constant 0 : index
      %68 = vector.load %arg8[%c5, %c1_57, %c0_58] : memref<6x10x128xbf16, #tpu.memory_space<vmem>>, vector<1x8x128xbf16>
      tpu.vector_store %arg8[%c5, %c1_57, %c0_58], %67 {strides = array<i32>} : memref<6x10x128xbf16, #tpu.memory_space<vmem>>, vector<1x8x128xbf16>,
    } else {
    }
    %c1_i32_15 = arith.constant 1 : i32
    %31 = arith.cmpi ne, %arg1, %c1_i32_15 : i32
    %32 = arith.extui %31 : i1 to i32
    %c0_i32_16 = arith.constant 0 : i32
    %33 = arith.cmpi ne, %32, %c0_i32_16 : i32
    scf.if %33 {
      %c4_i32_56 = arith.constant 4 : i32
      %67 = arith.addi %7, %c4_i32_56 : i32
      %c7_i32 = arith.constant 7 : i32
      %68 = arith.minsi %67, %c7_i32 : i32
      %c0_57 = arith.constant 0 : index
      %69 = arith.index_cast %68 : i32 to index
      %c0_58 = arith.constant 0 : index
      %c0_59 = arith.constant 0 : index
      %70 = vector.load %arg2[%c0_57, %69, %c0_58, %c0_59] : memref<1x8x8x128xbf16, #tpu.memory_space<vmem>>, vector<1x1x8x128xbf16>
      %71 = vector.shape_cast %70 : vector<1x1x8x128xbf16> to vector<1x8x128xbf16>
      %72 = arith.extf %71 : vector<1x8x128xbf16> to vector<1x8x128xf32>
      %73 = vector.shape_cast %0 : vector<1x128xf32> to vector<1x1x128xf32>
      %74 = vector.broadcast %73 : vector<1x1x128xf32> to vector<1x8x128xf32>
      %75 = arith.mulf %72, %74 : vector<1x8x128xf32>
      %76 = vector.shape_cast %1 : vector<1x128xf32> to vector<1x1x128xf32>
      %77 = vector.broadcast %76 : vector<1x1x128xf32> to vector<1x8x128xf32>
      %78 = arith.addf %75, %77 : vector<1x8x128xf32>
      %cst_60 = arith.constant 0.000000e+00 : f32
      %79 = vector.broadcast %cst_60 : f32 to vector<1x8x128xf32>
      %80 = arith.maximumf %78, %79 : vector<1x8x128xf32>
      %81 = arith.truncf %80 : vector<1x8x128xf32> to vector<1x8x128xbf16>
      %c5 = arith.constant 5 : index
      %c1_61 = arith.constant 1 : index
      %c0_62 = arith.constant 0 : index
      %82 = vector.load %arg8[%c5, %c1_61, %c0_62] : memref<6x10x128xbf16, #tpu.memory_space<vmem>>, vector<1x8x128xbf16>
      tpu.vector_store %arg8[%c5, %c1_61, %c0_62], %81 {strides = array<i32>} : memref<6x10x128xbf16, #tpu.memory_space<vmem>>, vector<1x8x128xbf16>,
    } else {
    }
    %c0_17 = arith.constant 0 : index
    %c0_18 = arith.constant 0 : index
    %c0_19 = arith.constant 0 : index
    %34 = vector.load %arg8[%c0_17, %c0_18, %c0_19] : memref<6x10x128xbf16, #tpu.memory_space<vmem>>, vector<4x8x128xbf16>
    %35 = vector.shape_cast %34 : vector<4x8x128xbf16> to vector<32x128xbf16>
    %c0_20 = arith.constant 0 : index
    %c1_21 = arith.constant 1 : index
    %c0_22 = arith.constant 0 : index
    %36 = vector.load %arg8[%c0_20, %c1_21, %c0_22] : memref<6x10x128xbf16, #tpu.memory_space<vmem>>, vector<4x8x128xbf16>
    %37 = vector.shape_cast %36 : vector<4x8x128xbf16> to vector<32x128xbf16>
    %c0_23 = arith.constant 0 : index
    %c2 = arith.constant 2 : index
    %c0_24 = arith.constant 0 : index
    %38 = vector.load %arg8[%c0_23, %c2, %c0_24] : memref<6x10x128xbf16, #tpu.memory_space<vmem>>, vector<4x8x128xbf16>
    %39 = vector.shape_cast %38 : vector<4x8x128xbf16> to vector<32x128xbf16>
    %c1_25 = arith.constant 1 : index
    %c0_26 = arith.constant 0 : index
    %c0_27 = arith.constant 0 : index
    %40 = vector.load %arg8[%c1_25, %c0_26, %c0_27] : memref<6x10x128xbf16, #tpu.memory_space<vmem>>, vector<4x8x128xbf16>
    %41 = vector.shape_cast %40 : vector<4x8x128xbf16> to vector<32x128xbf16>
    %c1_28 = arith.constant 1 : index
    %c1_29 = arith.constant 1 : index
    %c0_30 = arith.constant 0 : index
    %42 = vector.load %arg8[%c1_28, %c1_29, %c0_30] : memref<6x10x128xbf16, #tpu.memory_space<vmem>>, vector<4x8x128xbf16>
    %43 = vector.shape_cast %42 : vector<4x8x128xbf16> to vector<32x128xbf16>
    %c1_31 = arith.constant 1 : index
    %c2_32 = arith.constant 2 : index
    %c0_33 = arith.constant 0 : index
    %44 = vector.load %arg8[%c1_31, %c2_32, %c0_33] : memref<6x10x128xbf16, #tpu.memory_space<vmem>>, vector<4x8x128xbf16>
    %45 = vector.shape_cast %44 : vector<4x8x128xbf16> to vector<32x128xbf16>
    %c2_34 = arith.constant 2 : index
    %c0_35 = arith.constant 0 : index
    %c0_36 = arith.constant 0 : index
    %46 = vector.load %arg8[%c2_34, %c0_35, %c0_36] : memref<6x10x128xbf16, #tpu.memory_space<vmem>>, vector<4x8x128xbf16>
    %47 = vector.shape_cast %46 : vector<4x8x128xbf16> to vector<32x128xbf16>
    %c2_37 = arith.constant 2 : index
    %c1_38 = arith.constant 1 : index
    %c0_39 = arith.constant 0 : index
    %48 = vector.load %arg8[%c2_37, %c1_38, %c0_39] : memref<6x10x128xbf16, #tpu.memory_space<vmem>>, vector<4x8x128xbf16>
    %49 = vector.shape_cast %48 : vector<4x8x128xbf16> to vector<32x128xbf16>
    %c2_40 = arith.constant 2 : index
    %c2_41 = arith.constant 2 : index
    %c0_42 = arith.constant 0 : index
    %50 = vector.load %arg8[%c2_40, %c2_41, %c0_42] : memref<6x10x128xbf16, #tpu.memory_space<vmem>>, vector<4x8x128xbf16>
    %51 = vector.shape_cast %50 : vector<4x8x128xbf16> to vector<32x128xbf16>
    %52 = tpu.concatenate %35, %37, %39, %41, %43, %45, %47, %49, %51 in 1 : vector<32x128xbf16>, vector<32x128xbf16>, vector<32x128xbf16>, vector<32x128xbf16>, vector<32x128xbf16>, vector<32x128xbf16>, vector<32x128xbf16>, vector<32x128xbf16>, vector<32x128xbf16> -> vector<32x1152xbf16>
    %c0_43 = arith.constant 0 : index
    %c0_44 = arith.constant 0 : index
    %53 = vector.load %arg5[%c0_43, %c0_44] : memref<1152x128xbf16, #tpu.memory_space<vmem>>, vector<1152x128xbf16>
    %cst_45 = arith.constant dense<0.000000e+00> : vector<32x128xf32>
    %54 = tpu.matmul %52, %53, %cst_45 {dimension_numbers = #tpu.dot_dimension_numbers<[1], [0], [0], [1], [0, 0, 1, 1], [], []>} : vector<32x1152xbf16>, vector<1152x128xbf16>, vector<32x128xf32> -> vector<32x128xf32>
    %55 = arith.truncf %54 : vector<32x128xf32> to vector<32x128xbf16>
    %56 = vector.shape_cast %55 : vector<32x128xbf16> to vector<1x4x8x128xbf16>
    %c0_46 = arith.constant 0 : index
    %c0_47 = arith.constant 0 : index
    %c0_48 = arith.constant 0 : index
    %c0_49 = arith.constant 0 : index
    %57 = vector.load %arg6[%c0_46, %c0_47, %c0_48, %c0_49] : memref<1x4x8x128xbf16, #tpu.memory_space<vmem>>, vector<1x4x8x128xbf16>
    tpu.vector_store %arg6[%c0_46, %c0_47, %c0_48, %c0_49], %56 {strides = array<i32>} : memref<1x4x8x128xbf16, #tpu.memory_space<vmem>>, vector<1x4x8x128xbf16>,
    %58 = arith.extf %55 : vector<32x128xbf16> to vector<32x128xf32>
    %cst_50 = arith.constant dense<0.000000e+00> : vector<128xf32>
    %59 = vector.multi_reduction <add>, %58, %cst_50 [0] : vector<32x128xf32> to vector<128xf32>
    %60 = vector.shape_cast %59 : vector<128xf32> to vector<1x128xf32>
    %61 = arith.mulf %58, %58 : vector<32x128xf32>
    %cst_51 = arith.constant dense<0.000000e+00> : vector<128xf32>
    %62 = vector.multi_reduction <add>, %61, %cst_51 [0] : vector<32x128xf32> to vector<128xf32>
    %63 = vector.shape_cast %62 : vector<128xf32> to vector<1x128xf32>
    %64 = tpu.concatenate %60, %63 in 0 : vector<1x128xf32>, vector<1x128xf32> -> vector<2x128xf32>
    %65 = vector.shape_cast %64 : vector<2x128xf32> to vector<1x1x2x128xf32>
    %c0_52 = arith.constant 0 : index
    %c0_53 = arith.constant 0 : index
    %c0_54 = arith.constant 0 : index
    %c0_55 = arith.constant 0 : index
    %66 = vector.load %arg7[%c0_52, %c0_53, %c0_54, %c0_55] : memref<1x1x2x128xf32, #tpu.memory_space<vmem>>, vector<1x1x2x128xf32>
    tpu.vector_store %arg7[%c0_52, %c0_53, %c0_54, %c0_55], %65 {strides = array<i32>} : memref<1x1x2x128xf32, #tpu.memory_space<vmem>>, vector<1x1x2x128xf32>,
    return
  }
  func.func @transform_0(%arg0: i32, %arg1: i32) -> (i32, i32, i32, i32) {
    %c0_i32 = arith.constant 0 : i32
    %c0_i32_0 = arith.constant 0 : i32
    %c0_i32_1 = arith.constant 0 : i32
    %c0_i32_2 = arith.constant 0 : i32
    return %arg0, %c0_i32, %c0_i32_0, %c0_i32_1 : i32, i32, i32, i32
  }
  func.func @transform_1(%arg0: i32, %arg1: i32) -> (i32, i32) {
    %c0_i32 = arith.constant 0 : i32
    %c0_i32_0 = arith.constant 0 : i32
    %c0_i32_1 = arith.constant 0 : i32
    return %c0_i32, %c0_i32_0 : i32, i32
  }
  func.func @transform_2(%arg0: i32, %arg1: i32) -> (i32, i32) {
    %c0_i32 = arith.constant 0 : i32
    %c0_i32_0 = arith.constant 0 : i32
    %c0_i32_1 = arith.constant 0 : i32
    return %c0_i32, %c0_i32_0 : i32, i32
  }
  func.func @transform_3(%arg0: i32, %arg1: i32) -> (i32, i32) {
    %c0_i32 = arith.constant 0 : i32
    %c0_i32_0 = arith.constant 0 : i32
    %c0_i32_1 = arith.constant 0 : i32
    return %c0_i32, %c0_i32_0 : i32, i32
  }
  func.func @transform_4(%arg0: i32, %arg1: i32) -> (i32, i32, i32, i32) {
    %c0_i32 = arith.constant 0 : i32
    %c0_i32_0 = arith.constant 0 : i32
    %c0_i32_1 = arith.constant 0 : i32
    return %arg0, %arg1, %c0_i32, %c0_i32_0 : i32, i32, i32, i32
  }
  func.func @transform_5(%arg0: i32, %arg1: i32) -> (i32, i32, i32, i32) {
    %c0_i32 = arith.constant 0 : i32
    %c0_i32_0 = arith.constant 0 : i32
    %c0_i32_1 = arith.constant 0 : i32
    return %arg0, %arg1, %c0_i32, %c0_i32_0 : i32, i32, i32, i32
  }
}

module attributes {stable_mosaic.version = 11 : i64} {
  func.func @_residual_kernel(%arg0: i32, %arg1: memref<32x128xbf16, #tpu.memory_space<vmem>>, %arg2: memref<32x128xf32, #tpu.memory_space<vmem>>, %arg3: memref<1x128xf32, #tpu.memory_space<vmem>>, %arg4: memref<1x128xf32, #tpu.memory_space<vmem>>, %arg5: memref<32x128xf32, #tpu.memory_space<vmem>>) attributes {dimension_semantics = [#tpu.dimension_semantics<parallel>], iteration_bounds = array<i64: 4>, scalar_prefetch = 0 : i64, scratch_operands = 0 : i64, tpu.core_type = #tpu.core_type<tc>, window_params = [{transform_indices = @transform_0, window_bounds = array<i64: 32, 128>}, {transform_indices = @transform_1, window_bounds = array<i64: 32, 128>}, {pipeline_mode = #tpu.pipeline_mode<synchronous>, transform_indices = @transform_2, window_bounds = array<i64: 1, 128>}, {pipeline_mode = #tpu.pipeline_mode<synchronous>, transform_indices = @transform_3, window_bounds = array<i64: 1, 128>}, {transform_indices = @transform_4, window_bounds = array<i64: 32, 128>}]} {
    %c0 = arith.constant 0 : index
    %c0_0 = arith.constant 0 : index
    %0 = vector.load %arg1[%c0, %c0_0] : memref<32x128xbf16, #tpu.memory_space<vmem>>, vector<32x128xbf16>
    %1 = arith.extf %0 : vector<32x128xbf16> to vector<32x128xf32>
    %c0_1 = arith.constant 0 : index
    %c0_2 = arith.constant 0 : index
    %2 = vector.load %arg3[%c0_1, %c0_2] : memref<1x128xf32, #tpu.memory_space<vmem>>, vector<1x128xf32>
    %3 = vector.broadcast %2 : vector<1x128xf32> to vector<32x128xf32>
    %4 = arith.mulf %1, %3 : vector<32x128xf32>
    %c0_3 = arith.constant 0 : index
    %c0_4 = arith.constant 0 : index
    %5 = vector.load %arg4[%c0_3, %c0_4] : memref<1x128xf32, #tpu.memory_space<vmem>>, vector<1x128xf32>
    %6 = vector.broadcast %5 : vector<1x128xf32> to vector<32x128xf32>
    %7 = arith.addf %4, %6 : vector<32x128xf32>
    %c0_5 = arith.constant 0 : index
    %c0_6 = arith.constant 0 : index
    %8 = vector.load %arg2[%c0_5, %c0_6] : memref<32x128xf32, #tpu.memory_space<vmem>>, vector<32x128xf32>
    %9 = arith.addf %7, %8 : vector<32x128xf32>
    %cst = arith.constant 0.000000e+00 : f32
    %10 = vector.broadcast %cst : f32 to vector<32x128xf32>
    %11 = arith.maximumf %9, %10 : vector<32x128xf32>
    %c0_7 = arith.constant 0 : index
    %c0_8 = arith.constant 0 : index
    %12 = vector.load %arg5[%c0_7, %c0_8] : memref<32x128xf32, #tpu.memory_space<vmem>>, vector<32x128xf32>
    tpu.vector_store %arg5[%c0_7, %c0_8], %11 {strides = array<i32>} : memref<32x128xf32, #tpu.memory_space<vmem>>, vector<32x128xf32>,
    return
  }
  func.func @transform_0(%arg0: i32) -> (i32, i32) {
    %c0_i32 = arith.constant 0 : i32
    %c0_i32_0 = arith.constant 0 : i32
    return %arg0, %c0_i32 : i32, i32
  }
  func.func @transform_1(%arg0: i32) -> (i32, i32) {
    %c0_i32 = arith.constant 0 : i32
    %c0_i32_0 = arith.constant 0 : i32
    return %arg0, %c0_i32 : i32, i32
  }
  func.func @transform_2(%arg0: i32) -> (i32, i32) {
    %c0_i32 = arith.constant 0 : i32
    %c0_i32_0 = arith.constant 0 : i32
    %c0_i32_1 = arith.constant 0 : i32
    return %c0_i32, %c0_i32_0 : i32, i32
  }
  func.func @transform_3(%arg0: i32) -> (i32, i32) {
    %c0_i32 = arith.constant 0 : i32
    %c0_i32_0 = arith.constant 0 : i32
    %c0_i32_1 = arith.constant 0 : i32
    return %c0_i32, %c0_i32_0 : i32, i32
  }
  func.func @transform_4(%arg0: i32) -> (i32, i32) {
    %c0_i32 = arith.constant 0 : i32
    %c0_i32_0 = arith.constant 0 : i32
    return %arg0, %c0_i32 : i32, i32
  }
}

</mosaic_0001>

<bundles_post_ra>
// kernel: bottleneck_forward.4
= control target key start
LH: loop header
LB: loop body
LE: loop exit
PB: predicated region body
PF: predicated region fallthrough
CT: control target
= control target key end

     0   :  { %s554_s12 = smov 0   ;;  %s607_s0 = inlined_call_operand.vmem [shape: f32[128,128], index: 0, kind: input, shape index: {}]   ;;  %s608_s1 = inlined_call_operand.vmem [shape: bf16[128,128], index: 1, kind: input, shape index: {}]   ;;  %s609_s2 = inlined_call_operand.vmem [shape: bf16[128,128], index: 2, kind: output, shape index: {0}]   ;;  %s610_s3 = inlined_call_operand.vmem [shape: f32[4,2,128], index: 3, kind: output, shape index: {1}]  }
   0x1 LB: > { %s560_s13 = sadd.s32 4294967295, %s532_s12   ;;  %p445_p0 = scmp.ge.s32.totalorder %s532_s12, 1  ;;  %s532_s12 = sphi %s554_s12, %s14_s12  }
   0x2   : > { %p141_p1 = scmp.lt.s32.totalorder %s532_s12, 5 }
   0x4   : > { %p142_p2 = pnand %p445_p0, %p141_p1 }
   0x5   : > { %v518_v0 = vld [vmem:[%s608_s1] sm:$0xff] (!%p142_p2)   ;;  %s446_s16 = sshll.u32 (!%p142_p2), %s560_s13, 2  ;;  %v519_v1 = vld [vmem:[%s608_s1 + $0x8] sm:$0xff] (!%p142_p2)   ;;  %v520_v2 = vld [vmem:[%s608_s1 + $0x10] sm:$0xff] (!%p142_p2)   ;;  %p181_p4 = scmp.lt.s32.totalorder (!%p142_p2), %s560_s13, 3  ;;  %vm351_vm0 = vcmask (!%p142_p2), 1040384  }
   0x6   : > { %145 = sbr.rel (%p142_p2) target bundleno = 279 (0x117), region = 28  ;;  %p170_p3 = scmp.lt.s32.totalorder (!%p142_p2), %s446_s16, 15  ;;  %490 = vmatprep.subr.bf16.mxu0 (!%p142_p2), %v518_v0  ;;  %v521_v3 = vld [vmem:[%s608_s1 + $0x18] sm:$0xff] (!%p142_p2)   ;;  %v522_v7 = vld [vmem:[%s608_s1 + $0x20] sm:$0xff] (!%p142_p2)   ;;  %v523_v8 = vld [vmem:[%s608_s1 + $0x28] sm:$0xff] (!%p142_p2)  }
   0x7   : > { %491 = vmatpush3.bf16.msra.mxu0 (!%p142_p2), %v518_v0  ;;  %v524_v9 = vld [vmem:[%s608_s1 + $0x30] sm:$0xff] (!%p142_p2)   ;;  %v525_v10 = vld [vmem:[%s608_s1 + $0x38] sm:$0xff] (!%p142_p2)  }
   0x8   : > { %492 = vmatprep.subr.bf16.mxu0 (!%p142_p2), %v519_v1 }
   0xb   : > { %493 = vmatpush3.bf16.msra.mxu0 (!%p142_p2), %v519_v1 }
   0xc   : > { %494 = vmatprep.subr.bf16.mxu0 (!%p142_p2), %v520_v2 }
   0xd   : > { %s612_s16 = smov (!%p170_p3, %s446_s16), 15  ;;  %s614_s13 = smov (!%p181_p4, %s560_s13), 3 }
   0xe   : > { %s447_s21 = sshll.u32 %s612_s16, 3  ;;  %s449_s8 = sshll.u32 %s612_s16, 2 }
   0xf   : > { %s173_s24 = scalar_lea.vmem %s607_s0, %s447_s21  ;;  %495 = vmatpush3.bf16.msra.mxu0 %v520_v2  ;;  %s179_s11 = scalar_lea.vmem %s609_s2, %s449_s8 }
  0x10   : > { %v186_v4 = vld [vmem:[%s173_s24] sm:$0xff]  ;;  %v187_v5 = vld [vmem:[%s173_s24 + $0x8] sm:$0xff]  ;;  %496 = vmatprep.subr.bf16.mxu0 %v521_v3  ;;  %v188_v11 = vld [vmem:[%s173_s24 + $0x10] sm:$0xff]  ;;  %s450_s14 = sshll.u32 %s614_s13, 1 }
  0x11   : > { %v190_v6 = vpack.c.bf16 %v187_v5, %v186_v4  ;;  %v189_v12 = vld [vmem:[%s173_s24 + $0x18] sm:$0xff]  ;;  %s184_s17 = scalar_lea.vmem %s610_s3, %s450_s14 }
  0x12   : > { %v191_v13 = vpack.c.bf16 %v189_v12, %v188_v11 }
  0x13   : > { %506 = vmatprep.mubr.bf16.mxu0 %v190_v6  ;;  %497 = vmatpush3.bf16.msra.mxu0 %v521_v3 }
  0x14   : > { %498 = vmatprep.subr.bf16.mxu0 %v522_v7 }
  0x17   : > { %499 = vmatpush3.bf16.msra.mxu0 %v522_v7 }
  0x18   : > { %500 = vmatprep.subr.bf16.mxu0 %v523_v8 }
  0x1b   : > { %501 = vmatpush3.bf16.msra.mxu0 %v523_v8 }
  0x1c   : > { %502 = vmatprep.subr.bf16.mxu0 %v524_v9 }
  0x1f   : > { %503 = vmatpush3.bf16.msra.mxu0 %v524_v9 }
  0x20   : > { %504 = vmatprep.subr.bf16.mxu0 %v525_v10 }
  0x23   : > { %505 = vmatpush3.bf16.msra.mxu0 %v525_v10 }
  0x26   : > { %507 = vmatmul.mubr.bf16.vlgmr.msra.gmra.mrb[0].mxu0 %v191_v13 }
  0xf9   : > { %v508_v14 = vpop.f32.mrb[0].mxu0 }
  0xfa   : > { %v290_v15 = vpop.f32.mrb[1].mxu0 }
  0xfb   : > { %v509_v16 = vpop.f32.mrb[2].mxu0 }
  0xfc   : > { %v306_v17 = vpack.c.bf16 %v509_v16, %v508_v14  ;;  %v293_v18 = vpop.f32.mrb[3].mxu0 }
  0xfd   : > { %v305_v19 = vpack.c.bf16 %v293_v18, %v290_v15 }
  0xfe   : > { %479 = vst [vmem:[%s179_s11 + $0x8] sm:$0xff] %v306_v17   ;;  %v327_v20 = vunpack.c.l.bf16 %v306_v17  ;;  %v328_v23 = vunpack.c.h.bf16 %v306_v17 }
  0xff   : > { %473 = vst [vmem:[%s179_s11] sm:$0xff] %v305_v19   ;;  %v325_v21 = vunpack.c.l.bf16 %v305_v19  ;;  %v326_v22 = vunpack.c.h.bf16 %v305_v19 }
 0x100   : > { %v340_v27 = vmul.f32 %v327_v20, %v327_v20  ;;  %v341_v30 = vmul.f32 %v328_v23, %v328_v23 }
 0x101   : > { %v329_v24 = vadd.f32 %v326_v22, %v325_v21  ;;  %v338_v25 = vmul.f32 %v325_v21, %v325_v21  ;;  %v339_v26 = vmul.f32 %v326_v22, %v326_v22 }
 0x103   : > { %v330_v28 = vadd.f32 %v329_v24, %v327_v20  ;;  %v342_v29 = vadd.f32 %v339_v26, %v338_v25 }
 0x105   : > { %v331_v31 = vadd.f32 %v330_v28, %v328_v23  ;;  %v343_v32 = vadd.f32 %v342_v29, %v340_v27 }
 0x107   : > { %v332_v33 = vrot.slane %v331_v31, 4  ;;  %v344_v34 = vadd.f32 %v343_v32, %v341_v30 }
 0x109   : > { %v333_v35 = vadd.f32 %v332_v33, %v331_v31  ;;  %v345_v36 = vrot.slane %v344_v34, 4 }
 0x10b   : > { %v334_v37 = vrot.slane %v333_v35, 2  ;;  %v346_v38 = vadd.f32 %v345_v36, %v344_v34 }
 0x10d   : > { %v335_v39 = vadd.f32 %v334_v37, %v333_v35  ;;  %v347_v40 = vrot.slane %v346_v38, 2 }
 0x10f   : > { %v336_v41 = vrot.slane %v335_v39, 1  ;;  %v348_v42 = vadd.f32 %v347_v40, %v346_v38 }
 0x111   : > { %v349_v43 = vrot.slane %v348_v42, 1  ;;  %v337_v44 = vadd.f32 %v336_v41, %v335_v39 }
 0x113   : > { %v350_v45 = vadd.f32 %v349_v43, %v348_v42 }
 0x115   : > { %v352_v46 = vsel %vm351_vm0, %v337_v44, %v350_v45 }
 0x116   : > { %353 = vst [vmem:[%s184_s17] sm:$0x3] %v352_v46 }
 0x117 PF: > { %s14_s12 = sadd.s32 1, %s532_s12  }
 0x118   : > { %p11_p5 = scmp.ge.s32.totalorder %s14_s12, 6  }
 0x11a   :  { %13 = sbr.rel (!%p11_p5) target bundleno = 1 (0x1), region = 70 }

// kernel: bottleneck_forward.6
= control target key start
LH: loop header
LB: loop body
LE: loop exit
PB: predicated region body
PF: predicated region fallthrough
CT: control target
= control target key end

     0   :  { %s659_s18 = smov 0   ;;  %s721_s0 = inlined_call_operand.vmem [shape: bf16[128,128], index: 0, kind: input, shape index: {}]   ;;  %s722_s1 = inlined_call_operand.vmem [shape: f32[1,128], index: 1, kind: input, shape index: {}]   ;;  %s723_s2 = inlined_call_operand.vmem [shape: f32[1,128], index: 2, kind: input, shape index: {}]   ;;  %s724_s3 = inlined_call_operand.vmem [shape: bf16[128,128], index: 3, kind: input, shape index: {}]   ;;  %s725_s4 = inlined_call_operand.vmem [shape: bf16[128,128], index: 4, kind: output, shape index: {0}]   ;;  %s726_s5 = inlined_call_operand.vmem [shape: f32[4,2,128], index: 5, kind: output, shape index: {1}]  }
   0x1 LB: > { %s665_s19 = sadd.s32 4294967295, %s627_s18   ;;  %p529_p0 = scmp.ge.s32.totalorder %s627_s18, 1  ;;  %s627_s18 = sphi %s659_s18, %s16_s18  }
   0x2   : > { %p191_p1 = scmp.lt.s32.totalorder %s627_s18, 5 }
   0x4   : > { %p192_p2 = pnand %p529_p0, %p191_p1 }
   0x5   : > { %v613_v0 = vld [vmem:[%s724_s3] sm:$0xff] (!%p192_p2)   ;;  %s530_s22 = sshll.u32 (!%p192_p2), %s665_s19, 2  ;;  %v614_v1 = vld [vmem:[%s724_s3 + $0x8] sm:$0xff] (!%p192_p2)   ;;  %v615_v2 = vld [vmem:[%s724_s3 + $0x10] sm:$0xff] (!%p192_p2)   ;;  %p235_p4 = scmp.lt.s32.totalorder (!%p192_p2), %s665_s19, 3  ;;  %vm435_vm0 = vcmask (!%p192_p2), 1040384  }
   0x6   : > { %195 = sbr.rel (%p192_p2) target bundleno = 279 (0x117), region = 36  ;;  %p224_p3 = scmp.lt.s32.totalorder (!%p192_p2), %s530_s22, 15  ;;  %585 = vmatprep.subr.bf16.mxu0 (!%p192_p2), %v613_v0  ;;  %v616_v3 = vld [vmem:[%s724_s3 + $0x18] sm:$0xff] (!%p192_p2)   ;;  %v535_v5 = vld [vmem:[%s722_s1] ss:$0 sm:$0xff] (!%p192_p2)  ;;  %v618_v19 = vld [vmem:[%s724_s3 + $0x28] sm:$0xff] (!%p192_p2)  }
   0x7   : > { %586 = vmatpush3.bf16.msra.mxu0 (!%p192_p2), %v613_v0  ;;  %v536_v8 = vld [vmem:[%s723_s2] ss:$0 sm:$0xff] (!%p192_p2)  ;;  %v619_v23 = vld [vmem:[%s724_s3 + $0x30] sm:$0xff] (!%p192_p2)   ;;  %v620_v26 = vld [vmem:[%s724_s3 + $0x38] sm:$0xff] (!%p192_p2)  }
   0x8   : > { %587 = vmatprep.subr.bf16.mxu0 (!%p192_p2), %v614_v1  ;;  %v617_v12 = vld [vmem:[%s724_s3 + $0x20] sm:$0xff] (!%p192_p2)  }
   0xb   : > { %588 = vmatpush3.bf16.msra.mxu0 (!%p192_p2), %v614_v1 }
   0xc   : > { %589 = vmatprep.subr.bf16.mxu0 (!%p192_p2), %v615_v2 }
   0xd   : > { %s728_s22 = smov (!%p224_p3, %s530_s22), 15  ;;  %s730_s19 = smov (!%p235_p4, %s665_s19), 3 }
   0xe   : > { %s531_s27 = sshll.u32 %s728_s22, 2  ;;  %s534_s22 = sshll.u32 %s730_s19, 1 }
   0xf   : > { %s227_s30 = scalar_lea.vmem %s721_s0, %s531_s27  ;;  %590 = vmatpush3.bf16.msra.mxu0 %v615_v2  ;;  %s233_s25 = scalar_lea.vmem %s725_s4, %s531_s27 }
  0x10   : > { %v556_v4 = vld [vmem:[%s227_s30] sm:$0xff]   ;;  %v573_v9 = vld [vmem:[%s227_s30 + $0x8] sm:$0xff]   ;;  %591 = vmatprep.subr.bf16.mxu0 %v616_v3  ;;  %s238_s28 = scalar_lea.vmem %s726_s5, %s534_s22 }
  0x11   : > { %v557_v6 = vunpack.c.l.bf16 %v556_v4  ;;  %v558_v7 = vunpack.c.h.bf16 %v556_v4  ;;  %v561_v15 = vunpack.c.l.bf16 %v573_v9  ;;  %v562_v16 = vunpack.c.h.bf16 %v573_v9 }
  0x13   : > { %v255_v10 = vmul.f32 %v557_v6, %v535_v5  ;;  %v256_v11 = vmul.f32 %v558_v7, %v535_v5  ;;  %592 = vmatpush3.bf16.msra.mxu0 %v616_v3  ;;  %v257_v21 = vmul.f32 %v561_v15, %v535_v5  ;;  %v258_v22 = vmul.f32 %v562_v16, %v535_v5 }
  0x14   : > { %593 = vmatprep.subr.bf16.mxu0 %v617_v12 }
  0x15   : > { %v266_v13 = vadd.f32 %v536_v8, %v255_v10  ;;  %v267_v14 = vadd.f32 %v536_v8, %v256_v11  ;;  %v268_v24 = vadd.f32 %v536_v8, %v257_v21  ;;  %v269_v25 = vadd.f32 %v536_v8, %v258_v22 }
  0x17   : > { %v270_v17 = vmax.f32 %v266_v13, 0.0  ;;  %v271_v18 = vmax.f32 %v267_v14, 0.0  ;;  %594 = vmatpush3.bf16.msra.mxu0 %v617_v12  ;;  %v272_v27 = vmax.f32 %v268_v24, 0.0  ;;  %v273_v28 = vmax.f32 %v269_v25, 0.0 }
  0x18   : > { %595 = vmatprep.subr.bf16.mxu0 %v618_v19 }
  0x19   : > { %v274_v20 = vpack.c.bf16 %v271_v18, %v270_v17  ;;  %v275_v29 = vpack.c.bf16 %v273_v28, %v272_v27 }
  0x1b   : > { %601 = vmatprep.mubr.bf16.mxu0 %v274_v20  ;;  %596 = vmatpush3.bf16.msra.mxu0 %v618_v19 }
  0x1c   : > { %597 = vmatprep.subr.bf16.mxu0 %v619_v23 }
  0x1f   : > { %598 = vmatpush3.bf16.msra.mxu0 %v619_v23 }
  0x20   : > { %599 = vmatprep.subr.bf16.mxu0 %v620_v26 }
  0x23   : > { %600 = vmatpush3.bf16.msra.mxu0 %v620_v26 }
  0x26   : > { %602 = vmatmul.mubr.bf16.vlgmr.msra.gmra.mrb[0].mxu0 %v275_v29 }
  0xf9   : > { %v603_v30 = vpop.f32.mrb[0].mxu0 }
  0xfa   : > { %v374_v31 = vpop.f32.mrb[1].mxu0 }
  0xfb   : > { %v604_v32 = vpop.f32.mrb[2].mxu0 }
  0xfc   : > { %v390_v33 = vpack.c.bf16 %v604_v32, %v603_v30  ;;  %v377_v34 = vpop.f32.mrb[3].mxu0 }
  0xfd   : > { %v389_v35 = vpack.c.bf16 %v377_v34, %v374_v31 }
  0xfe   : > { %574 = vst [vmem:[%s233_s25 + $0x8] sm:$0xff] %v390_v33   ;;  %v411_v36 = vunpack.c.l.bf16 %v390_v33  ;;  %v412_v39 = vunpack.c.h.bf16 %v390_v33 }
  0xff   : > { %567 = vst [vmem:[%s233_s25] sm:$0xff] %v389_v35   ;;  %v409_v37 = vunpack.c.l.bf16 %v389_v35  ;;  %v410_v38 = vunpack.c.h.bf16 %v389_v35 }
 0x100   : > { %v424_v43 = vmul.f32 %v411_v36, %v411_v36  ;;  %v425_v46 = vmul.f32 %v412_v39, %v412_v39 }
 0x101   : > { %v413_v40 = vadd.f32 %v410_v38, %v409_v37  ;;  %v422_v41 = vmul.f32 %v409_v37, %v409_v37  ;;  %v423_v42 = vmul.f32 %v410_v38, %v410_v38 }
 0x103   : > { %v414_v44 = vadd.f32 %v413_v40, %v411_v36  ;;  %v426_v45 = vadd.f32 %v423_v42, %v422_v41 }
 0x105   : > { %v415_v47 = vadd.f32 %v414_v44, %v412_v39  ;;  %v427_v48 = vadd.f32 %v426_v45, %v424_v43 }
 0x107   : > { %v416_v49 = vrot.slane %v415_v47, 4  ;;  %v428_v50 = vadd.f32 %v427_v48, %v425_v46 }
 0x109   : > { %v417_v51 = vadd.f32 %v416_v49, %v415_v47  ;;  %v429_v52 = vrot.slane %v428_v50, 4 }
 0x10b   : > { %v418_v53 = vrot.slane %v417_v51, 2  ;;  %v430_v54 = vadd.f32 %v429_v52, %v428_v50 }
 0x10d   : > { %v419_v55 = vadd.f32 %v418_v53, %v417_v51  ;;  %v431_v56 = vrot.slane %v430_v54, 2 }
 0x10f   : > { %v420_v57 = vrot.slane %v419_v55, 1  ;;  %v432_v58 = vadd.f32 %v431_v56, %v430_v54 }
 0x111   : > { %v433_v59 = vrot.slane %v432_v58, 1  ;;  %v421_v60 = vadd.f32 %v420_v57, %v419_v55 }
 0x113   : > { %v434_v61 = vadd.f32 %v433_v59, %v432_v58 }
 0x115   : > { %v436_v62 = vsel %vm435_vm0, %v421_v60, %v434_v61 }
 0x116   : > { %437 = vst [vmem:[%s238_s28] sm:$0x3] %v436_v62 }
 0x117 PF: > { %s16_s18 = sadd.s32 1, %s627_s18  }
 0x118   : > { %p13_p5 = scmp.ge.s32.totalorder %s16_s18, 6  }
 0x11a   :  { %15 = sbr.rel (!%p13_p5) target bundleno = 1 (0x1), region = 78 }

// kernel: bottleneck_forward.7
= control target key start
LH: loop header
LB: loop body
LE: loop exit
PB: predicated region body
PF: predicated region fallthrough
CT: control target
= control target key end

     0   :  { %s402_s15 = smov 0   ;;  %s428_s0 = inlined_call_operand.vmem [shape: bf16[128,128], index: 0, kind: input, shape index: {}]   ;;  %s429_s1 = inlined_call_operand.vmem [shape: f32[128,128], index: 1, kind: input, shape index: {}]   ;;  %s430_s2 = inlined_call_operand.vmem [shape: f32[1,128], index: 2, kind: input, shape index: {}]   ;;  %s431_s3 = inlined_call_operand.vmem [shape: f32[1,128], index: 3, kind: input, shape index: {}]   ;;  %s432_s4 = inlined_call_operand.vmem [shape: f32[128,128], index: 4, kind: output, shape index: {}]  }
   0x1 LB: > { %s337_s16 = sadd.s32 4294967295, %s375_s15   ;;  %p341_p0 = scmp.ge.s32.totalorder %s375_s15, 1  ;;  %s375_s15 = sphi %s402_s15, %s14_s15  }
   0x2   : > { %p174_p1 = scmp.lt.s32.totalorder %s375_s15, 5 }
   0x4   : > { %p175_p2 = pnand %p341_p0, %p174_p1 }
   0x5   : > { %s342_s17 = sshll.u32 (!%p175_p2), %s337_s16, 2  ;;  %v348_v1 = vld [vmem:[%s430_s2] ss:$0 sm:$0xff] (!%p175_p2) }
   0x6   : > { %178 = sbr.rel (%p175_p2) target bundleno = 29 (0x1d), region = 36  ;;  %p206_p3 = scmp.lt.s32.totalorder (!%p175_p2), %s342_s17, 15  ;;  %v349_v5 = vld [vmem:[%s431_s3] ss:$0 sm:$0xff] (!%p175_p2) }
   0xd   : > { %s434_s17 = smov (!%p206_p3, %s342_s17), 15 }
   0xe   : > { %s343_s18 = sshll.u32 %s434_s17, 2  ;;  %s345_s19 = sshll.u32 %s434_s17, 3 }
   0xf   : > { %s209_s22 = scalar_lea.vmem %s428_s0, %s343_s18  ;;  %s215_s27 = scalar_lea.vmem %s429_s1, %s345_s19 }
  0x10   : > { %v353_v0 = vld [vmem:[%s209_s22] sm:$0xff]   ;;  %v360_v4 = vld [vmem:[%s209_s22 + $0x8] sm:$0xff]   ;;  %v255_v16 = vld [vmem:[%s215_s27 + $0x10] sm:$0xff]  ;;  %s221_s6 = scalar_lea.vmem %s432_s4, %s345_s19 }
  0x11   : > { %v354_v2 = vunpack.c.l.bf16 %v353_v0  ;;  %v355_v3 = vunpack.c.h.bf16 %v353_v0  ;;  %v358_v6 = vunpack.c.l.bf16 %v360_v4  ;;  %v359_v7 = vunpack.c.h.bf16 %v360_v4  ;;  %v253_v10 = vld [vmem:[%s215_s27] sm:$0xff]  ;;  %v254_v11 = vld [vmem:[%s215_s27 + $0x8] sm:$0xff]  ;;  %v256_v17 = vld [vmem:[%s215_s27 + $0x18] sm:$0xff] }
  0x13   : > { %v238_v8 = vmul.f32 %v354_v2, %v348_v1  ;;  %v239_v9 = vmul.f32 %v355_v3, %v348_v1  ;;  %v240_v12 = vmul.f32 %v358_v6, %v348_v1  ;;  %v241_v13 = vmul.f32 %v359_v7, %v348_v1 }
  0x15   : > { %v249_v14 = vadd.f32 %v349_v5, %v238_v8  ;;  %v250_v15 = vadd.f32 %v349_v5, %v239_v9  ;;  %v251_v18 = vadd.f32 %v349_v5, %v240_v12  ;;  %v252_v19 = vadd.f32 %v349_v5, %v241_v13 }
  0x17   : > { %v257_v20 = vadd.f32 %v253_v10, %v249_v14  ;;  %v258_v21 = vadd.f32 %v254_v11, %v250_v15  ;;  %v259_v22 = vadd.f32 %v255_v16, %v251_v18  ;;  %v260_v23 = vadd.f32 %v256_v17, %v252_v19 }
  0x19   : > { %v261_v24 = vmax.f32 %v257_v20, 0.0  ;;  %v262_v25 = vmax.f32 %v258_v21, 0.0  ;;  %v263_v26 = vmax.f32 %v259_v22, 0.0  ;;  %v264_v27 = vmax.f32 %v260_v23, 0.0 }
  0x1b   : > { %265 = vst [vmem:[%s221_s6] sm:$0xff] %v261_v24  ;;  %266 = vst [vmem:[%s221_s6 + $0x8] sm:$0xff] %v262_v25 }
  0x1c   : > { %267 = vst [vmem:[%s221_s6 + $0x10] sm:$0xff] %v263_v26  ;;  %268 = vst [vmem:[%s221_s6 + $0x18] sm:$0xff] %v264_v27 }
  0x1d PF: > { %s14_s15 = sadd.s32 1, %s375_s15  }
  0x1e   : > { %p11_p4 = scmp.ge.s32.totalorder %s14_s15, 6  }
  0x20   :  { %13 = sbr.rel (!%p11_p4) target bundleno = 1 (0x1), region = 69 }

// kernel: bottleneck_forward.5
= control target key start
LH: loop header
LB: loop body
LE: loop exit
PB: predicated region body
PF: predicated region fallthrough
CT: control target
= control target key end

     0   :  { %s2403_s18 = smov 0   ;;  %s2405_s19 = smov 0   ;;  %s2926_s0 = inlined_call_operand.vmem [shape: bf16[2,8,8,128], index: 0, kind: input, shape index: {}]   ;;  %s2927_s1 = inlined_call_operand.vmem [shape: f32[1,128], index: 1, kind: input, shape index: {}]   ;;  %s2928_s2 = inlined_call_operand.vmem [shape: f32[1,128], index: 2, kind: input, shape index: {}]   ;;  %s2929_s3 = inlined_call_operand.vmem [shape: bf16[1152,128], index: 3, kind: input, shape index: {}]   ;;  %s2930_s4 = inlined_call_operand.vmem [shape: bf16[2,8,8,128], index: 4, kind: output, shape index: {0}]   ;;  %s2931_s5 = inlined_call_operand.vmem [shape: f32[2,2,2,128], index: 5, kind: output, shape index: {1}]  }
   0x1   :  { %2932 = sst [smem:[#allocation3_spill]] %s2927_s1  ;;  %s2407_s20 = smov 0  }
   0x2   :  { %s2409_s21 = smov 0   ;;  %s2411_s22 = smov 0  }
   0x3 LB: > { %s25_s23 = sadd.s32 1, %s2363_s20  ;;  %s28_s24 = sadd.s32 1, %s2367_s21  ;;  %s2371_s22 = sphi %s2411_s22, %s16_s22   ;;  %s2367_s21 = sphi %s2409_s21, %s2949_s21   ;;  %s2363_s20 = sphi %s2407_s20, %s2948_s20   ;;  %s2359_s19 = sphi %s2405_s19, %s2947_s19   ;;  %s2355_s18 = sphi %s2403_s18, %s2946_s18  }
   0x4   : > { %p26_p0 = scmp.ge.s32.totalorder %s25_s23, 2  ;;  %p1908_p1 = scmp.ge.s32.totalorder %s2371_s22, 1 }
   0x5   : > { %p206_p2 = scmp.lt.s32.totalorder %s2371_s22, 5 }
   0x6   : > { %s2951_s23 = smov (%p26_p0, %s25_s23), 0  ;;  %s2953_s24 = smov (!%p26_p0, %s28_s24), %s2367_s21 }
   0x7   : > { %p207_p3 = pnand %p1908_p1, %p206_p2  ;;  %p30_p4 = scmp.ge.s32.totalorder %s2953_s24, 2 }
   0x8   : > { %p246_p5 = scmp.lt.s32.totalorder (!%p207_p3), %s2359_s19, 1  ;;  %s2439_s25 = sshll.u32 (!%p207_p3), %s2355_s18, 2  ;;  %v2449_v1 = vld [vmem:[%s2928_s2] ss:$0 sm:$0xff] (!%p207_p3) }
   0x9   : > { %s2955_s24 = smov (%p30_p4, %s2953_s24), 0  ;;  %210 = sbr.rel (%p207_p3) target bundleno = 466 (0x1d2), region = 36 }
   0xa   : > { %s2933_s1 = sld [smem:[#allocation3_spill]] (!%p207_p3)  ;;  %p254_p6 = scmp.lt.s32.totalorder (!%p207_p3), %s2439_s25, 7 }
   0xb   : > { %p263_p7 = scmp.lt.s32.totalorder (!%p207_p3), %s2355_s18, 1  ;;  %p272_p8 = scmp.eq.s32.totalorder (!%p207_p3), %s2359_s19, 0 }
   0xc   : > { %p273_p9 = scmp.eq.s32.totalorder (!%p207_p3), %s2355_s18, 0 }
   0xe   : > { %p274_p10 = pnand (!%p207_p3), %p273_p9, %p272_p8 }
  0x10   : > { %v2444_v0 = vld [vmem:[%s2933_s1] ss:$0 sm:$0xff]  ;;  %s247_s30 = scalar_select %p246_p5, %s2359_s19, 1 }
  0x11   : > { %s255_s6 = scalar_select %p254_p6, %s2439_s25, 7 }
  0x12   : > { %s2041_s7 = sshll.u32 %s247_s30, 5  ;;  %s1912_s8 = sshll.u32 %s247_s30, 3  ;;  %vm278_vm0 = vcmask (!%p274_p10), 1040384   ;;  %vm279_vm1 = vsmask.f32 (!%p274_p10), 256 }
  0x13   : > { %s2458_s11 = scalar_lea.vmem %s2926_s0, %s2041_s7  ;;  %s257_s12 = sadd.s32 %s1912_s8, %s255_s6  ;;  %v281_v2 = vld [vmem:[#allocation2] sm:$0x1] (!%p274_p10)  ;;  %vm2475_vm2 = vmand (!%p274_p10), %vm278_vm0, %vm279_vm1  ;;  %v284_v4 = vld [vmem:[#allocation2 + $0x8] sm:$0x1] (!%p274_p10)  ;;  %vm299_vm3 = vsmask.f32 (!%p274_p10), 7938 }
  0x14   : > { %s1913_s13 = sshll.u32 %s257_s12, 2  ;;  %s1914_s14 = sshll.u32 %s247_s30, 1  ;;  %v287_v5 = vld [vmem:[#allocation2 + $0x10] sm:$0x1] (!%p274_p10)  ;;  %v282_v6 = vsel (!%p274_p10), %vm2475_vm2, 0, %v281_v2  ;;  %v285_v7 = vsel (!%p274_p10), %vm2475_vm2, 0, %v284_v4  ;;  %vm2485_vm4 = vmand (!%p274_p10), %vm278_vm0, %vm299_vm3 }
  0x15   : > { %s2463_s17 = scalar_lea.vmem %s2930_s4, %s1913_s13  ;;  %277 = sbr.rel (%p274_p10) target bundleno = 32 (0x20), region = 40  ;;  %v288_v8 = vsel (!%p274_p10), %vm2475_vm2, 0, %v287_v5  ;;  %v290_v9 = vld [vmem:[#allocation2 + $0x18] sm:$0x1] (!%p274_p10)  ;;  %283 = vst [vmem:[#allocation2] sm:$0x1] (!%p274_p10), %v282_v6 }
  0x16   : > { %s264_s26 = scalar_select %p263_p7, %s2355_s18, 1 }
  0x17   : > { %286 = vst [vmem:[#allocation2 + $0x8] sm:$0x1] (!%p274_p10), %v285_v7  ;;  %289 = vst [vmem:[#allocation2 + $0x10] sm:$0x1] (!%p274_p10), %v288_v8  ;;  %v291_v11 = vsel (!%p274_p10), %vm2475_vm2, 0, %v290_v9 }
  0x18   : > { %s266_s27 = sadd.s32 %s1914_s14, %s264_s26  ;;  %v293_v12 = vld [vmem:[#allocation2 + $0x20] sm:$0x1] (!%p274_p10)  ;;  %v296_v13 = vld [vmem:[#allocation2 + $0x28] sm:$0x1] (!%p274_p10)  ;;  %292 = vst [vmem:[#allocation2 + $0x18] sm:$0x1] (!%p274_p10), %v291_v11 }
  0x19   : > { %s1915_s28 = sshll.u32 %s266_s27, 1  ;;  %v294_v14 = vsel (!%p274_p10), %vm2475_vm2, 0, %v293_v12  ;;  %v297_v15 = vsel (!%p274_p10), %vm2475_vm2, 0, %v296_v13  ;;  %v301_v16 = vld [vmem:[#allocation2 + $0x4] sm:$0x1] (!%p274_p10) }
  0x1a   : > { %s2473_s7 = scalar_lea.vmem %s2931_s5, %s1915_s28  ;;  %v304_v17 = vld [vmem:[#allocation2 + $0xc] sm:$0x1] (!%p274_p10)  ;;  %295 = vst [vmem:[#allocation2 + $0x20] sm:$0x1] (!%p274_p10), %v294_v14  ;;  %298 = vst [vmem:[#allocation2 + $0x28] sm:$0x1] (!%p274_p10), %v297_v15 }
  0x1b   : > { %v302_v18 = vsel (!%p274_p10), %vm2485_vm4, 0, %v301_v16  ;;  %v305_v19 = vsel (!%p274_p10), %vm2485_vm4, 0, %v304_v17  ;;  %v307_v20 = vld [vmem:[#allocation2 + $0x14] sm:$0x1] (!%p274_p10)  ;;  %v310_v21 = vld [vmem:[#allocation2 + $0x1c] sm:$0x1] (!%p274_p10) }
  0x1c   : > { %303 = vst [vmem:[#allocation2 + $0x4] sm:$0x1] %v302_v18  ;;  %306 = vst [vmem:[#allocation2 + $0xc] sm:$0x1] %v305_v19  ;;  %v308_v22 = vsel %vm2485_vm4, 0, %v307_v20  ;;  %v311_v23 = vsel %vm2485_vm4, 0, %v310_v21 }
  0x1d   : > { %v313_v24 = vld [vmem:[#allocation2 + $0x24] sm:$0x1]  ;;  %v316_v25 = vld [vmem:[#allocation2 + $0x2c] sm:$0x1]  ;;  %309 = vst [vmem:[#allocation2 + $0x14] sm:$0x1] %v308_v22 }
  0x1e   : > { %312 = vst [vmem:[#allocation2 + $0x1c] sm:$0x1] %v311_v23  ;;  %v314_v26 = vsel %vm2485_vm4, 0, %v313_v24  ;;  %v317_v27 = vsel %vm2485_vm4, 0, %v316_v25 }
  0x1f   : > { %315 = vst [vmem:[#allocation2 + $0x24] sm:$0x1] %v314_v26  ;;  %318 = vst [vmem:[#allocation2 + $0x2c] sm:$0x1] %v317_v27 }
  0x20 PF: > { %s2042_s1 = sshll.u32 %s2355_s18, 4  ;;  %vm411_vm5 = vcmask 1043456   ;;  %vm412_vm6 = vsmask.f32 7938  ;;  %vm417_vm7 = vcmask 1040384   ;;  %p1924_p11 = scmp.ne.s32.totalorder %s2355_s18, 0 }
  0x21   : > { %s321_s19 = scalar_lea.vmem %s2458_s11, %s2042_s1  ;;  %vm418_vm8 = vsmask.f32 256  ;;  %vm2519_vm9 = vmand %vm411_vm5, %vm412_vm6  ;;  %v444_v26 = vld [vmem:[#allocation2] sm:$0xf] (!%p1924_p11) }
  0x22   : > { %v2054_v28 = vld [vmem:[%s321_s19] sm:$0xff]   ;;  %v2071_v31 = vld [vmem:[%s321_s19 + $0x8] sm:$0xff]   ;;  %v423_v63 = vld [vmem:[#allocation2 + $0x10] sm:$0xf] }
  0x23   : > { %v2055_v29 = vunpack.c.l.bf16 %v2054_v28  ;;  %v2056_v30 = vunpack.c.h.bf16 %v2054_v28  ;;  %v2059_v32 = vunpack.c.l.bf16 %v2071_v31  ;;  %v2060_v33 = vunpack.c.h.bf16 %v2071_v31  ;;  %v414_v54 = vld [vmem:[#allocation2 + $0x8] sm:$0xf]  ;;  %vm2525_vm10 = vmand %vm417_vm7, %vm418_vm8  ;;  %v429_v5 = vld [vmem:[#allocation2 + $0x18] sm:$0xf] }
  0x24   : > { %v426_v2 = vld [vmem:[#allocation2 + $0x14] sm:$0x1]  ;;  %v445_v28 = vsel (!%p1924_p11), %vm2519_vm9, 0, %v444_v26 }
  0x25   : > { %v336_v34 = vmul.f32 %v2055_v29, %v2444_v0  ;;  %v337_v35 = vmul.f32 %v2056_v30, %v2444_v0  ;;  %v338_v36 = vmul.f32 %v2059_v32, %v2444_v0  ;;  %v339_v37 = vmul.f32 %v2060_v33, %v2444_v0  ;;  %v432_v6 = vld [vmem:[#allocation2 + $0x1c] sm:$0x1]  ;;  %v435_v12 = vld [vmem:[#allocation2 + $0x20] sm:$0xf]  ;;  %446 = vst [vmem:[#allocation2] sm:$0xf] (!%p1924_p11), %v445_v28 }
  0x26   : > { %v438_v13 = vld [vmem:[#allocation2 + $0x24] sm:$0x1] }
  0x27   : > { %v346_v38 = vadd.f32 %v2449_v1, %v336_v34  ;;  %v347_v39 = vadd.f32 %v2449_v1, %v337_v35  ;;  %v348_v40 = vadd.f32 %v2449_v1, %v338_v36  ;;  %v349_v41 = vadd.f32 %v2449_v1, %v339_v37  ;;  %v420_v55 = vld [vmem:[#allocation2 + $0xc] sm:$0x1]  ;;  %v447_v27 = vld [vmem:[#allocation2 + $0x4] sm:$0x1] (!%p1924_p11) }
  0x28   : > { %v448_v29 = vsel (!%p1924_p11), %vm2525_vm10, 0, %v447_v27 }
  0x29   : > { %v350_v42 = vmax.f32 %v346_v38, 0.0  ;;  %v351_v43 = vmax.f32 %v347_v39, 0.0  ;;  %v352_v44 = vmax.f32 %v348_v40, 0.0  ;;  %v353_v45 = vmax.f32 %v349_v41, 0.0  ;;  %449 = vst [vmem:[#allocation2 + $0x4] sm:$0x1] (!%p1924_p11), %v448_v29 }
  0x2b   : > { %v2043_v46 = vpack.c.bf16 %v350_v42, %v350_v42  ;;  %v2044_v47 = vpack.c.bf16 %v351_v43, %v351_v43  ;;  %v2045_v48 = vpack.c.bf16 %v352_v44, %v352_v44  ;;  %v2046_v49 = vpack.c.bf16 %v353_v45, %v353_v45 }
  0x2d   : > { %v371_v50 = vshrl.u32 %v2043_v46, 16  ;;  %v374_v51 = vshll.u32 %v2043_v46, 16  ;;  %v379_v52 = vshrl.u32 %v2044_v47, 16  ;;  %v382_v53 = vshll.u32 %v2044_v47, 16 }
  0x2e   : > { %v387_v56 = vshrl.u32 %v2045_v48, 16  ;;  %v390_v57 = vshll.u32 %v2045_v48, 16  ;;  %v395_v58 = vshrl.u32 %v2046_v49, 16  ;;  %v398_v59 = vshll.u32 %v2046_v49, 16 }
  0x2f   : > { %v373_v60 = vrot.slane %v371_v50, 7  ;;  %v381_v62 = vrot.slane %v379_v52, 7 }
  0x30   : > { %v389_v4 = vrot.slane %v387_v56, 7  ;;  %v397_v7 = vrot.slane %v395_v58, 7 }
  0x31   : > { %v376_v8 = vor.u32 %v374_v51, %v373_v60  ;;  %v377_v9 = vrot.slane %v373_v60, 4  ;;  %v384_v10 = vor.u32 %v382_v53, %v381_v62  ;;  %v385_v11 = vrot.slane %v381_v62, 4  ;;  %443 = sbr.rel (%p1924_p11) target bundleno = 56 (0x38), region = 44 }
  0x32   : > { %v392_v14 = vor.u32 %v390_v57, %v389_v4  ;;  %v393_v15 = vrot.slane %v389_v4, 4  ;;  %v400_v16 = vor.u32 %v398_v59, %v397_v7  ;;  %v401_v17 = vrot.slane %v397_v7, 4 }
  0x33   : > { %v415_v18 = vsel %vm2519_vm9, %v376_v8, %v414_v54  ;;  %v421_v19 = vsel %vm2525_vm10, %v377_v9, %v420_v55  ;;  %v424_v20 = vsel %vm2519_vm9, %v384_v10, %v423_v63  ;;  %v427_v21 = vsel %vm2525_vm10, %v385_v11, %v426_v2 }
  0x34   : > { %416 = vst [vmem:[#allocation2 + $0x8] sm:$0xf] %v415_v18  ;;  %422 = vst [vmem:[#allocation2 + $0xc] sm:$0x1] %v421_v19  ;;  %v430_v22 = vsel %vm2519_vm9, %v392_v14, %v429_v5  ;;  %v433_v23 = vsel %vm2525_vm10, %v393_v15, %v432_v6  ;;  %v436_v24 = vsel %vm2519_vm9, %v400_v16, %v435_v12 }
  0x35   : > { %425 = vst [vmem:[#allocation2 + $0x10] sm:$0xf] %v424_v20  ;;  %428 = vst [vmem:[#allocation2 + $0x14] sm:$0x1] %v427_v21  ;;  %v439_v25 = vsel %vm2525_vm10, %v401_v17, %v438_v13 }
  0x36   : > { %431 = vst [vmem:[#allocation2 + $0x18] sm:$0xf] %v430_v22  ;;  %434 = vst [vmem:[#allocation2 + $0x1c] sm:$0x1] %v433_v23 }
  0x37   : > { %437 = vst [vmem:[#allocation2 + $0x20] sm:$0xf] %v436_v24  ;;  %440 = vst [vmem:[#allocation2 + $0x24] sm:$0x1] %v439_v25 }
  0x38 PF: > { %453 = sbr.rel (%p273_p9) target bundleno = 85 (0x55), region = 48  ;;  %s1926_s30 = sadd.s32 (!%p273_p9), 4294967295, %s2439_s25  ;;  %v478_v39 = vld [vmem:[#allocation2] sm:$0xf] (!%p273_p9)  ;;  %v481_v40 = vld [vmem:[#allocation2 + $0x4] sm:$0x1] (!%p273_p9) }
  0x39   : > { %p455_p12 = scmp.gt.s32.totalorder (!%p273_p9), %s1926_s30, 0 }
  0x3f   : > { %s2957_s30 = smov (!%p455_p12, %s1926_s30), 0 }
  0x40   : > { %s1927_s6 = sshll.u32 %s2957_s30, 2 }
  0x41   : > { %s458_s8 = scalar_lea.vmem %s2458_s11, %s1927_s6 }
  0x42   : > { %v459_v30 = vld [vmem:[%s458_s8] sm:$0xf] }
  0x43   : > { %v460_v31 = vunpack.c.l.bf16 %v459_v30 }
  0x45   : > { %v461_v32 = vmul.f32 %v2444_v0, %v460_v31 }
  0x47   : > { %v462_v33 = vadd.f32 %v2449_v1, %v461_v32 }
  0x49   : > { %v463_v34 = vmax.f32 %v462_v33, 0.0 }
  0x4b   : > { %v2047_v35 = vpack.c.bf16 %v463_v34, %v463_v34 }
  0x4d   : > { %v469_v36 = vshrl.u32 %v2047_v35, 16  ;;  %v472_v37 = vshll.u32 %v2047_v35, 16 }
  0x4f   : > { %v471_v38 = vrot.slane %v469_v36, 7 }
  0x51   : > { %v474_v41 = vor.u32 %v472_v37, %v471_v38  ;;  %v475_v42 = vrot.slane %v471_v38, 4 }
  0x53   : > { %v479_v43 = vsel %vm2519_vm9, %v474_v41, %v478_v39  ;;  %v482_v44 = vsel %vm2525_vm10, %v475_v42, %v481_v40 }
  0x54   : > { %480 = vst [vmem:[#allocation2] sm:$0xf] %v479_v43  ;;  %483 = vst [vmem:[#allocation2 + $0x4] sm:$0x1] %v482_v44 }
  0x55 PF: > { %p1929_p13 = scmp.ne.s32.totalorder %s2355_s18, 1 }
  0x56   : > { %v489_v45 = vld [vmem:[#allocation2 + $0x28] sm:$0xf] (!%p1929_p13)  ;;  %v492_v46 = vld [vmem:[#allocation2 + $0x2c] sm:$0x1] (!%p1929_p13) }
  0x57   : > { %487 = sbr.rel (%p1929_p13) target bundleno = 94 (0x5e), region = 52  ;;  %v490_v47 = vsel (!%p1929_p13), %vm2519_vm9, 0, %v489_v45  ;;  %v493_v48 = vsel (!%p1929_p13), %vm2525_vm10, 0, %v492_v46 }
  0x58   : > { %491 = vst [vmem:[#allocation2 + $0x28] sm:$0xf] (!%p1929_p13), %v490_v47  ;;  %494 = vst [vmem:[#allocation2 + $0x2c] sm:$0x1] (!%p1929_p13), %v493_v48 }
  0x5e PF: > { %p1930_p0 = scmp.eq.s32.totalorder %s2355_s18, 1 }
  0x5f   : > { %s499_s9 = sadd.s32 (!%p1930_p0), 4, %s2439_s25  ;;  %v524_v58 = vld [vmem:[#allocation2 + $0x28] sm:$0xf] (!%p1930_p0)  ;;  %v527_v59 = vld [vmem:[#allocation2 + $0x2c] sm:$0x1] (!%p1930_p0) }
  0x60   : > { %498 = sbr.rel (%p1930_p0) target bundleno = 125 (0x7d), region = 56  ;;  %p500_p1 = scmp.lt.s32.totalorder (!%p1930_p0), %s499_s9, 7 }
  0x67   : > { %s2959_s9 = smov (!%p500_p1, %s499_s9), 7 }
  0x68   : > { %s1931_s10 = sshll.u32 %s2959_s9, 2 }
  0x69   : > { %s503_s12 = scalar_lea.vmem %s2458_s11, %s1931_s10 }
  0x6a   : > { %v504_v49 = vld [vmem:[%s503_s12] sm:$0xf] }
  0x6b   : > { %v505_v50 = vunpack.c.l.bf16 %v504_v49 }
  0x6d   : > { %v506_v51 = vmul.f32 %v2444_v0, %v505_v50 }
  0x6f   : > { %v507_v52 = vadd.f32 %v2449_v1, %v506_v51 }
  0x71   : > { %v508_v53 = vmax.f32 %v507_v52, 0.0 }
  0x73   : > { %v2048_v54 = vpack.c.bf16 %v508_v53, %v508_v53 }
  0x75   : > { %v514_v55 = vshrl.u32 %v2048_v54, 16  ;;  %v517_v56 = vshll.u32 %v2048_v54, 16 }
  0x77   : > { %v516_v57 = vrot.slane %v514_v55, 7 }
  0x79   : > { %v519_v60 = vor.u32 %v517_v56, %v516_v57  ;;  %v520_v62 = vrot.slane %v516_v57, 4 }
  0x7b   : > { %v525_v63 = vsel %vm2519_vm9, %v519_v60, %v524_v58  ;;  %v528_v2 = vsel %vm2525_vm10, %v520_v62, %v527_v59 }
  0x7c   : > { %526 = vst [vmem:[#allocation2 + $0x28] sm:$0xf] %v525_v63  ;;  %529 = vst [vmem:[#allocation2 + $0x2c] sm:$0x1] %v528_v2 }
  0x7d PF: > { %v2255_v0 = vld [vmem:[%s2929_s3 + $0x40] sm:$0xff]   ;;  %v2259_v4 = vld [vmem:[%s2929_s3 + $0x48] sm:$0xff]   ;;  %v2263_v8 = vld [vmem:[%s2929_s3 + $0x50] sm:$0xff]   ;;  %vm609_vm11 = vcmask 1042432   ;;  %vm610_vm12 = vcmask 1046532  }
  0x7e   : > { %v2256_v1 = vld [vmem:[%s2929_s3 + $0xc0] sm:$0xff]   ;;  %2073 = vmatprep.subr.bf16.mxu0 %v2255_v0  ;;  %v2260_v5 = vld [vmem:[%s2929_s3 + $0xc8] sm:$0xff]   ;;  %v2264_v9 = vld [vmem:[%s2929_s3 + $0xd0] sm:$0xff]   ;;  %vm538_vm13 = vsmask.f32 3328 }
  0x7f   : > { %v2257_v61 = vld [vmem:[%s2929_s3] sm:$0xff]   ;;  %2101 = vmatprep.subr.bf16.mxu1 %v2256_v1  ;;  %v2261_v6 = vld [vmem:[%s2929_s3 + $0x8] sm:$0xff]   ;;  %v2265_v10 = vld [vmem:[%s2929_s3 + $0x10] sm:$0xff]   ;;  %vm539_vm14 = vsmask.f32 7440 }
  0x80   : > { %v2258_v3 = vld [vmem:[%s2929_s3 + $0x80] sm:$0xff]   ;;  %2074 = vmatpush3.bf16.msra.mxu0 %v2257_v61  ;;  %v2262_v7 = vld [vmem:[%s2929_s3 + $0x88] sm:$0xff]   ;;  %v2266_v11 = vld [vmem:[%s2929_s3 + $0x90] sm:$0xff]  }
  0x81   : > { %2102 = vmatpush3.bf16.msra.mxu1 %v2258_v3  ;;  %2075 = vmatprep.subr.bf16.mxu0 %v2259_v4  ;;  %v2267_v12 = vld [vmem:[%s2929_s3 + $0x58] sm:$0xff]   ;;  %v2271_v16 = vld [vmem:[%s2929_s3 + $0x60] sm:$0xff]   ;;  %v2275_v20 = vld [vmem:[%s2929_s3 + $0x68] sm:$0xff]  }
  0x82   : > { %2103 = vmatprep.subr.bf16.mxu1 %v2260_v5  ;;  %v2268_v13 = vld [vmem:[%s2929_s3 + $0xd8] sm:$0xff]   ;;  %v2272_v17 = vld [vmem:[%s2929_s3 + $0xe0] sm:$0xff]   ;;  %v2276_v21 = vld [vmem:[%s2929_s3 + $0xe8] sm:$0xff]  }
  0x83   : > { %v2269_v14 = vld [vmem:[%s2929_s3 + $0x18] sm:$0xff]   ;;  %v2273_v18 = vld [vmem:[%s2929_s3 + $0x20] sm:$0xff]   ;;  %v2277_v22 = vld [vmem:[%s2929_s3 + $0x28] sm:$0xff]  }
  0x84   : > { %2076 = vmatpush3.bf16.msra.mxu0 %v2261_v6  ;;  %v2270_v15 = vld [vmem:[%s2929_s3 + $0x98] sm:$0xff]   ;;  %v2274_v19 = vld [vmem:[%s2929_s3 + $0xa0] sm:$0xff]   ;;  %v2278_v23 = vld [vmem:[%s2929_s3 + $0xa8] sm:$0xff]  }
  0x85   : > { %2104 = vmatpush3.bf16.msra.mxu1 %v2262_v7  ;;  %2077 = vmatprep.subr.bf16.mxu0 %v2263_v8  ;;  %v2279_v24 = vld [vmem:[%s2929_s3 + $0x70] sm:$0xff]   ;;  %v2283_v28 = vld [vmem:[%s2929_s3 + $0x78] sm:$0xff]   ;;  %v530_v32 = vld [vmem:[#allocation2] sm:$0xf] }
  0x86   : > { %2105 = vmatprep.subr.bf16.mxu1 %v2264_v9  ;;  %v2280_v25 = vld [vmem:[%s2929_s3 + $0xf0] sm:$0xff]   ;;  %v2284_v29 = vld [vmem:[%s2929_s3 + $0xf8] sm:$0xff]   ;;  %v531_v33 = vld [vmem:[#allocation2 + $0x8] sm:$0xf]  ;;  %v542_v36 = vshrl.u32 %v530_v32, 16  ;;  %v545_v37 = vshll.u32 %v530_v32, 16 }
  0x87   : > { %v2281_v26 = vld [vmem:[%s2929_s3 + $0x30] sm:$0xff]   ;;  %v2285_v30 = vld [vmem:[%s2929_s3 + $0x38] sm:$0xff]   ;;  %v534_v34 = vld [vmem:[#allocation2 + $0x4] sm:$0x1]  ;;  %v556_v39 = vshrl.u32 %v531_v33, 16  ;;  %v559_v40 = vshll.u32 %v531_v33, 16  ;;  %v1945_v5 = vcombine.low %v530_v32, %v531_v33 }
  0x88   : > { %2078 = vmatpush3.bf16.msra.mxu0 %v2265_v10  ;;  %v2282_v27 = vld [vmem:[%s2929_s3 + $0xb0] sm:$0xff]   ;;  %v2286_v31 = vld [vmem:[%s2929_s3 + $0xb8] sm:$0xff]   ;;  %v535_v35 = vld [vmem:[#allocation2 + $0xc] sm:$0x1]  ;;  %v551_v38 = vshll.u32 %v534_v34, 16  ;;  %v544_v44 = vrot.slane %v542_v36, 4 }
  0x89   : > { %2106 = vmatpush3.bf16.msra.mxu1 %v2266_v11  ;;  %2079 = vmatprep.subr.bf16.mxu0 %v2267_v12  ;;  %v565_v41 = vshll.u32 %v535_v35, 16  ;;  %v2670_v42 = vld [vmem:[#allocation2 + $0x8] sm:$0xf]  ;;  %v2672_v43 = vld [vmem:[#allocation2 + $0x10] sm:$0xf]  ;;  %v547_v45 = vrot.slane %v545_v37, 5  ;;  %vm2678_vm15 = vmor %vm609_vm11, %vm610_vm12 }
  0x8a   : > { %2107 = vmatprep.subr.bf16.mxu1 %v2268_v13  ;;  %v558_v46 = vrot.slane %v556_v39, 4  ;;  %v597_v47 = vld [vmem:[#allocation2] sm:$0xe]  ;;  %v561_v48 = vrot.slane %v559_v40, 5  ;;  %v614_v49 = vrot.slane %v534_v34, 5  ;;  %v553_v52 = vrot.slane %v551_v38, 5  ;;  %vm2684_vm0 = vmor %vm538_vm13, %vm539_vm14 }
  0x8b   : > { %v598_v50 = vld [vmem:[#allocation2 + $0x8] sm:$0xe]  ;;  %v548_v51 = vor.u32 %v547_v45, %v544_v44  ;;  %v618_v53 = vrot.slane %v535_v35, 5  ;;  %v1951_v54 = vcombine.low %v2670_v42, %v2672_v43  ;;  %v567_v58 = vrot.slane %v565_v41, 5  ;;  %v2289_v60 = vld [vmem:[%s2929_s3 + $0x140] sm:$0xff]  }
  0x8c   : > { %2080 = vmatpush3.bf16.msra.mxu0 %v2269_v14  ;;  %v562_v57 = vor.u32 %v561_v48, %v558_v46  ;;  %v1933_v59 = vrot.slane %v597_v47, 9  ;;  %v1934_v63 = vrot.slane %v598_v50, 9  ;;  %v2291_v3 = vld [vmem:[%s2929_s3 + $0x1c0] sm:$0xff]   ;;  %v2293_v10 = vld [vmem:[%s2929_s3 + $0x148] sm:$0xff]   ;;  %v2297_v14 = vld [vmem:[%s2929_s3 + $0x150] sm:$0xff]  }
  0x8d   : > { %2108 = vmatpush3.bf16.msra.mxu1 %v2270_v15  ;;  %2081 = vmatprep.subr.bf16.mxu0 %v2271_v16  ;;  %v549_v62 = vrot.slane %v548_v51, 4  ;;  %v2292_v7 = vld [vmem:[%s2929_s3 + $0x180] sm:$0xff]   ;;  %v2295_v11 = vld [vmem:[%s2929_s3 + $0x1c8] sm:$0xff]   ;;  %v2299_v15 = vld [vmem:[%s2929_s3 + $0x1d0] sm:$0xff]  }
  0x8e   : > { %2109 = vmatprep.subr.bf16.mxu1 %v2272_v17  ;;  %1554 = vmatprep.mubr.bf16.mxu1 %v1951_v54  ;;  %v563_v2 = vrot.slane %v562_v57, 4  ;;  %v615_v0 = vsel %vm2678_vm15, %v1933_v59, %v614_v49  ;;  %v619_v61 = vsel %vm2678_vm15, %v1934_v63, %v618_v53  ;;  %v2290_v9 = vld [vmem:[%s2929_s3 + $0x100] sm:$0xff]   ;;  %v2296_v12 = vld [vmem:[%s2929_s3 + $0x188] sm:$0xff]   ;;  %v2300_v16 = vld [vmem:[%s2929_s3 + $0x190] sm:$0xff]  }
  0x8f   : > { %v554_v1 = vsel %vm2684_vm0, %v549_v62, %v553_v52  ;;  %v1949_v6 = vcombine.low %v615_v0, %v619_v61  ;;  %v2294_v13 = vld [vmem:[%s2929_s3 + $0x108] sm:$0xff]   ;;  %v2298_v17 = vld [vmem:[%s2929_s3 + $0x110] sm:$0xff]   ;;  %v2308_v32 = vld [vmem:[%s2929_s3 + $0x1a0] sm:$0xff]  }
  0x90   : > { %2082 = vmatpush3.bf16.msra.mxu0 %v2273_v18  ;;  %v568_v4 = vsel %vm2684_vm0, %v563_v2, %v567_v58  ;;  %v637_v18 = vshrl.u32 %v2670_v42, 16  ;;  %v2309_v34 = vld [vmem:[%s2929_s3 + $0x168] sm:$0xff]   ;;  %v2763_v35 = vld [vmem:[#allocation2 + $0x10] sm:$0xf]  ;;  %v2765_v36 = vld [vmem:[#allocation2 + $0x18] sm:$0xf] }
  0x91   : > { %2110 = vmatpush3.bf16.msra.mxu1 %v2274_v19  ;;  %2083 = vmatprep.subr.bf16.mxu0 %v2275_v20  ;;  %v1947_v8 = vcombine.low %v554_v1, %v568_v4  ;;  %v2301_v19 = vld [vmem:[%s2929_s3 + $0x158] sm:$0xff]   ;;  %v640_v20 = vshll.u32 %v2670_v42, 16  ;;  %v536_v37 = vld [vmem:[#allocation2 + $0x14] sm:$0x1]  ;;  %v570_v39 = vshrl.u32 %v2763_v35, 16  ;;  %v573_v40 = vshll.u32 %v2763_v35, 16 }
  0x92   : > { %2111 = vmatprep.subr.bf16.mxu1 %v2276_v21  ;;  %v2303_v21 = vld [vmem:[%s2929_s3 + $0x1d8] sm:$0xff]   ;;  %v579_v41 = vshll.u32 %v536_v37, 16  ;;  %v584_v42 = vshrl.u32 %v2765_v36, 16  ;;  %v631_v49 = vld [vmem:[#allocation2 + $0x20] sm:$0xf]  ;;  %v2311_v57 = vld [vmem:[%s2929_s3 + $0x128] sm:$0xff]  }
  0x93   : > { %1505 = vmatprep.mubr.bf16.mxu0 %v1947_v8  ;;  %v537_v38 = vld [vmem:[#allocation2 + $0x1c] sm:$0x1]  ;;  %v572_v46 = vrot.slane %v570_v39, 4  ;;  %v575_v47 = vrot.slane %v573_v40, 5  ;;  %v630_v48 = vld [vmem:[#allocation2 + $0x18] sm:$0xf] }
  0x94   : > { %2084 = vmatpush3.bf16.msra.mxu0 %v2277_v22  ;;  %v651_v22 = vshrl.u32 %v2672_v43, 16  ;;  %v593_v44 = vshll.u32 %v537_v38, 16  ;;  %v586_v51 = vrot.slane %v584_v42, 4  ;;  %v581_v54 = vrot.slane %v579_v41, 5  ;;  %v599_v62 = vld [vmem:[#allocation2 + $0x10] sm:$0xe] }
  0x95   : > { %2112 = vmatpush3.bf16.msra.mxu1 %v2278_v23  ;;  %2085 = vmatprep.subr.bf16.mxu0 %v2279_v24  ;;  %v2304_v23 = vld [vmem:[%s2929_s3 + $0x198] sm:$0xff]   ;;  %v654_v24 = vshll.u32 %v2672_v43, 16  ;;  %v587_v43 = vshll.u32 %v2765_v36, 16  ;;  %v576_v53 = vor.u32 %v575_v47, %v572_v46  ;;  %v622_v2 = vrot.slane %v536_v37, 5 }
  0x96   : > { %2113 = vmatprep.subr.bf16.mxu1 %v2280_v25  ;;  %v2302_v25 = vld [vmem:[%s2929_s3 + $0x118] sm:$0xff]   ;;  %v595_v59 = vrot.slane %v593_v44, 5  ;;  %v1935_v61 = vrot.slane %v599_v62, 9 }
  0x97   : > { %v656_v33 = vrot.slane %v654_v24, 5  ;;  %v589_v52 = vrot.slane %v587_v43, 5  ;;  %v600_v63 = vld [vmem:[#allocation2 + $0x18] sm:$0xe]  ;;  %v577_v1 = vrot.slane %v576_v53, 4  ;;  %v2318_v24 = vld [vmem:[%s2929_s3 + $0x1b0] sm:$0xff]  }
  0x98   : > { %2086 = vmatpush3.bf16.msra.mxu0 %v2281_v26  ;;  %v639_v26 = vrot.slane %v637_v18, 4  ;;  %v679_v18 = vshrl.u32 %v631_v49, 16  ;;  %v2322_v44 = vld [vmem:[%s2929_s3 + $0x1b8] sm:$0xff]  }
  0x99   : > { %2114 = vmatpush3.bf16.msra.mxu1 %v2282_v27  ;;  %2087 = vmatprep.subr.bf16.mxu0 %v2283_v28  ;;  %v2305_v27 = vld [vmem:[%s2929_s3 + $0x160] sm:$0xff]   ;;  %v642_v28 = vrot.slane %v640_v20, 5  ;;  %v590_v58 = vor.u32 %v589_v52, %v586_v51  ;;  %v582_v8 = vsel %vm2684_vm0, %v577_v1, %v581_v54  ;;  %v2316_v20 = vld [vmem:[%s2929_s3 + $0x130] sm:$0xff]  }
  0x9a   : > { %2115 = vmatprep.subr.bf16.mxu1 %v2284_v29  ;;  %v2306_v29 = vld [vmem:[%s2929_s3 + $0x120] sm:$0xff]   ;;  %v2835_v54 = vld [vmem:[#allocation2 + $0x14] sm:$0x1] }
  0x9b   : > { %v643_v45 = vor.u32 %v642_v28, %v639_v26  ;;  %v2319_v26 = vld [vmem:[%s2929_s3 + $0x178] sm:$0xff]   ;;  %v739_v62 = vshll.u32 %v2835_v54, 16 }
  0x9c   : > { %2088 = vmatpush3.bf16.msra.mxu0 %v2285_v30  ;;  %v2307_v30 = vld [vmem:[%s2929_s3 + $0x1e0] sm:$0xff]   ;;  %v2320_v28 = vld [vmem:[%s2929_s3 + $0x138] sm:$0xff]  }
  0x9d   : > { %2116 = vmatpush3.bf16.msra.mxu1 %v2286_v31  ;;  %2129 = vmatprep.subr.bf16.mxu0 %v2289_v60  ;;  %v653_v31 = vrot.slane %v651_v22, 4  ;;  %v1952_v60 = vcombine.low %v630_v48, %v631_v49  ;;  %v2774_v0 = vrot.slane %v643_v45, 4  ;;  %v2317_v22 = vld [vmem:[%s2929_s3 + $0x1f0] sm:$0xff]   ;;  %v2323_v45 = vld [vmem:[%s2929_s3 + $0x200] sm:$0xff]  }
  0x9e   : > { %2157 = vmatprep.subr.bf16.mxu1 %v2291_v3  ;;  %v1936_v3 = vrot.slane %v600_v63, 9 }
  0x9f   : > { %1506 = vmatmul.mubr.bf16.vlgmr.msra.gmra.mrb[0].mxu0 %v1945_v5  ;;  %v657_v50 = vor.u32 %v656_v33, %v653_v31  ;;  %v591_v5 = vrot.slane %v590_v58, 4  ;;  %v632_v31 = vld [vmem:[#allocation2 + $0xc] sm:$0x1]  ;;  %v692_v33 = vld [vmem:[#allocation2 + $0x8] sm:$0xe] }
  0xa0   : > { %1555 = vmatmul.mubr.bf16.vlgmr.msra.gmra.mrb[0].mxu1 %v1949_v6  ;;  %2130 = vmatpush3.bf16.msra.mxu0 %v2290_v9  ;;  %v626_v6 = vrot.slane %v537_v38, 5  ;;  %v665_v9 = vshrl.u32 %v630_v48, 16  ;;  %v1937_v37 = vrot.slane %v692_v33, 9  ;;  %v706_v38 = vrot.slane %v632_v31, 5 }
  0xa1   : > { %2158 = vmatpush3.bf16.msra.mxu1 %v2292_v7  ;;  %2131 = vmatprep.subr.bf16.mxu0 %v2293_v10  ;;  %v2776_v4 = vrot.slane %v657_v50, 4  ;;  %v2313_v7 = vld [vmem:[%s2929_s3 + $0x1e8] sm:$0xff]   ;;  %v623_v10 = vsel %vm2678_vm15, %v1935_v61, %v622_v2 }
  0xa2   : > { %2159 = vmatprep.subr.bf16.mxu1 %v2295_v11  ;;  %1562 = vmatprep.mubr.bf16.mxu1 %v1952_v60  ;;  %v2314_v11 = vld [vmem:[%s2929_s3 + $0x1a8] sm:$0xff]   ;;  %v707_v43 = vsel %vm2678_vm15, %v1937_v37, %v706_v38 }
  0xa3   : > { %v2325_v2 = vld [vmem:[%s2929_s3 + $0x208] sm:$0xff]  }
  0xa4   : > { %2132 = vmatpush3.bf16.msra.mxu0 %v2294_v13  ;;  %v668_v13 = vshll.u32 %v630_v48, 16  ;;  %v2825_v48 = vld [vmem:[#allocation2 + $0x10] sm:$0xf] }
  0xa5   : > { %2160 = vmatpush3.bf16.msra.mxu1 %v2296_v12  ;;  %2133 = vmatprep.subr.bf16.mxu0 %v2297_v14  ;;  %v596_v12 = vsel %vm2684_vm0, %v591_v5, %v595_v59  ;;  %v1946_v14 = vcombine.low %v2763_v35, %v2765_v36  ;;  %v693_v36 = vld [vmem:[#allocation2 + $0x10] sm:$0xe]  ;;  %v730_v58 = vshrl.u32 %v2825_v48, 16  ;;  %v733_v60 = vshll.u32 %v2825_v48, 16 }
  0xa6   : > { %2161 = vmatprep.subr.bf16.mxu1 %v2299_v15  ;;  %v627_v15 = vsel %vm2678_vm15, %v1936_v3, %v626_v6  ;;  %v1938_v39 = vrot.slane %v693_v36, 9  ;;  %v741_v5 = vrot.slane %v739_v62, 5 }
  0xa8   : > { %2134 = vmatpush3.bf16.msra.mxu0 %v2298_v17  ;;  %v1948_v17 = vcombine.low %v582_v8, %v596_v12  ;;  %v694_v12 = vld [vmem:[#allocation2 + $0x18] sm:$0xe] }
  0xa9   : > { %2162 = vmatpush3.bf16.msra.mxu1 %v2300_v16  ;;  %2135 = vmatprep.subr.bf16.mxu0 %v2301_v19  ;;  %v2315_v16 = vld [vmem:[%s2929_s3 + $0x170] sm:$0xff]   ;;  %v1950_v19 = vcombine.low %v623_v10, %v627_v15  ;;  %v1939_v15 = vrot.slane %v694_v12, 9  ;;  %v787_v12 = vld [vmem:[#allocation2 + $0x20] sm:$0xe] }
  0xaa   : > { %2163 = vmatprep.subr.bf16.mxu1 %v2303_v21  ;;  %v682_v21 = vshll.u32 %v631_v49, 16  ;;  %1513 = vmatprep.mubr.bf16.mxu0 %v1948_v17  ;;  %v2827_v49 = vld [vmem:[#allocation2 + $0x18] sm:$0xf]  ;;  %v1943_v56 = vrot.slane %v787_v12, 9 }
  0xab   : > { %1563 = vmatmul.mubr.bf16.gmra.mrb[4].mxu1 %v1950_v19  ;;  %1514 = vmatmul.mubr.bf16.gmra.mrb[4].mxu0 %v1946_v14  ;;  %v744_v63 = vshrl.u32 %v2827_v49, 16  ;;  %v747_v1 = vshll.u32 %v2827_v49, 16  ;;  %v695_v14 = vld [vmem:[#allocation2 + $0x20] sm:$0xe] }
  0xac   : > { %2136 = vmatpush3.bf16.msra.mxu0 %v2302_v25  ;;  %v670_v25 = vrot.slane %v668_v13, 5 }
  0xad   : > { %2164 = vmatpush3.bf16.msra.mxu1 %v2304_v23  ;;  %2137 = vmatprep.subr.bf16.mxu0 %v2305_v27  ;;  %v667_v23 = vrot.slane %v665_v9, 4  ;;  %v681_v27 = vrot.slane %v679_v18, 4  ;;  %v746_v6 = vrot.slane %v744_v63, 4  ;;  %v749_v9 = vrot.slane %v747_v1, 5  ;;  %v2326_v18 = vld [vmem:[%s2929_s3 + $0x210] sm:$0xff]  }
  0xae   : > { %2165 = vmatprep.subr.bf16.mxu1 %v2307_v30  ;;  %v2321_v30 = vld [vmem:[%s2929_s3 + $0x1f8] sm:$0xff]  }
  0xaf   : > { %v671_v46 = vor.u32 %v670_v25, %v667_v23  ;;  %v750_v19 = vor.u32 %v749_v9, %v746_v6  ;;  %v786_v1 = vld [vmem:[#allocation2 + $0x18] sm:$0xe] }
  0xb0   : > { %2138 = vmatpush3.bf16.msra.mxu0 %v2306_v29  ;;  %v684_v29 = vrot.slane %v682_v21, 5 }
  0xb1   : > { %2166 = vmatpush3.bf16.msra.mxu1 %v2308_v32  ;;  %2139 = vmatprep.subr.bf16.mxu0 %v2309_v34  ;;  %v633_v32 = vld [vmem:[#allocation2 + $0x14] sm:$0x1]  ;;  %v646_v34 = vshll.u32 %v632_v31, 16  ;;  %v672_v3 = vrot.slane %v671_v46, 4  ;;  %v724_v31 = vld [vmem:[#allocation2 + $0x28] sm:$0xf] }
  0xb2   : > { %2167 = vmatprep.subr.bf16.mxu1 %v2313_v7  ;;  %v660_v35 = vshll.u32 %v633_v32, 16  ;;  %v710_v40 = vrot.slane %v633_v32, 5  ;;  %v685_v50 = vor.u32 %v684_v29, %v681_v27  ;;  %v634_v7 = vld [vmem:[#allocation2 + $0x1c] sm:$0x1]  ;;  %v751_v27 = vrot.slane %v750_v19, 4 }
  0xb3   : > { %v648_v41 = vrot.slane %v646_v34, 5  ;;  %v674_v21 = vshll.u32 %v634_v7, 16  ;;  %v2861_v34 = vld [vmem:[#allocation2 + $0x24] sm:$0x1] }
  0xb4   : > { %2140 = vmatpush3.bf16.msra.mxu0 %v2311_v57  ;;  %v662_v42 = vrot.slane %v660_v35, 5  ;;  %v711_v47 = vsel %vm2678_vm15, %v1938_v39, %v710_v40  ;;  %v2837_v57 = vld [vmem:[#allocation2 + $0x1c] sm:$0x1]  ;;  %v686_v8 = vrot.slane %v685_v50, 4  ;;  %v2863_v35 = vld [vmem:[#allocation2 + $0x2c] sm:$0x1] }
  0xb5   : > { %2168 = vmatpush3.bf16.msra.mxu1 %v2314_v11  ;;  %2141 = vmatprep.subr.bf16.mxu0 %v2315_v16  ;;  %v1955_v51 = vcombine.low %v707_v43, %v711_v47  ;;  %v649_v52 = vsel %vm2684_vm0, %v2774_v0, %v648_v41  ;;  %v732_v0 = vrot.slane %v730_v58, 4  ;;  %v753_v61 = vshll.u32 %v2837_v57, 16  ;;  %v635_v11 = vld [vmem:[#allocation2 + $0x24] sm:$0x1] }
  0xb6   : > { %2169 = vmatprep.subr.bf16.mxu1 %v2317_v22  ;;  %v663_v53 = vsel %vm2684_vm0, %v2776_v4, %v662_v42  ;;  %v735_v4 = vrot.slane %v733_v60, 5  ;;  %v714_v16 = vrot.slane %v634_v7, 5  ;;  %v718_v17 = vrot.slane %v635_v11, 5  ;;  %v2328_v42 = vld [vmem:[%s2929_s3 + $0x218] sm:$0xff]  }
  0xb7   : > { %v1953_v59 = vcombine.low %v649_v52, %v663_v53  ;;  %1603 = vmatprep.mubr.bf16.mxu0 %v1955_v51  ;;  %v755_v10 = vrot.slane %v753_v61, 5  ;;  %v688_v22 = vshll.u32 %v635_v11, 16  ;;  %v676_v29 = vrot.slane %v674_v21, 5  ;;  %v2329_v51 = vld [vmem:[%s2929_s3 + $0x220] sm:$0xff]   ;;  %v2330_v61 = vld [vmem:[%s2929_s3 + $0x228] sm:$0xff]   ;;  %v2331_v11 = vld [vmem:[%s2929_s3 + $0x230] sm:$0xff]  }
  0xb8   : > { %2142 = vmatpush3.bf16.msra.mxu0 %v2316_v20  ;;  %v736_v13 = vor.u32 %v735_v4, %v732_v0  ;;  %v1940_v20 = vrot.slane %v695_v14, 9  ;;  %v715_v25 = vsel %vm2678_vm15, %v1939_v15, %v714_v16  ;;  %v767_v41 = vshll.u32 %v2861_v34, 16  ;;  %v785_v0 = vld [vmem:[#allocation2 + $0x10] sm:$0xe] }
  0xb9   : > { %2170 = vmatpush3.bf16.msra.mxu1 %v2318_v24  ;;  %2143 = vmatprep.subr.bf16.mxu0 %v2319_v26  ;;  %v1957_v24 = vcombine.low %v2825_v48, %v2827_v49  ;;  %v2855_v26 = vld [vmem:[#allocation2 + $0x20] sm:$0xf]  ;;  %v756_v38 = vsel %vm2684_vm0, %v751_v27, %v755_v10  ;;  %v677_v39 = vsel %vm2684_vm0, %v672_v3, %v676_v29  ;;  %v772_v47 = vshrl.u32 %v724_v31, 16 }
  0xba   : > { %2171 = vmatprep.subr.bf16.mxu1 %v2321_v30  ;;  %v737_v23 = vrot.slane %v736_v13, 4  ;;  %v690_v30 = vrot.slane %v688_v22, 5  ;;  %v758_v36 = vshrl.u32 %v2855_v26, 16  ;;  %v761_v37 = vshll.u32 %v2855_v26, 16  ;;  %v788_v13 = vld [vmem:[#allocation2 + $0x28] sm:$0xe] }
  0xbb   : > { %v775_v48 = vshll.u32 %v724_v31, 16  ;;  %v781_v49 = vshll.u32 %v2863_v35, 16  ;;  %v769_v52 = vrot.slane %v767_v41, 5  ;;  %v774_v53 = vrot.slane %v772_v47, 4 }
  0xbc   : > { %2144 = vmatpush3.bf16.msra.mxu0 %v2320_v28  ;;  %v719_v28 = vsel %vm2678_vm15, %v1940_v20, %v718_v17  ;;  %v742_v32 = vsel %vm2684_vm0, %v737_v23, %v741_v5  ;;  %v691_v40 = vsel %vm2684_vm0, %v686_v8, %v690_v30  ;;  %v763_v46 = vrot.slane %v761_v37, 5  ;;  %v2332_v17 = vld [vmem:[%s2929_s3 + $0x238] sm:$0xff]  }
  0xbd   : > { %2172 = vmatpush3.bf16.msra.mxu1 %v2322_v44  ;;  %2195 = vmatprep.subr.bf16.mxu0 %v2323_v45  ;;  %v1956_v33 = vcombine.low %v715_v25, %v719_v28  ;;  %v1959_v43 = vcombine.low %v742_v32, %v756_v38  ;;  %v1954_v44 = vcombine.low %v677_v39, %v691_v40  ;;  %v777_v58 = vrot.slane %v775_v48, 5 }
  0xbe   : > { %v803_v62 = vrot.slane %v2837_v57, 5  ;;  %v1941_v3 = vrot.slane %v785_v0, 9  ;;  %v1942_v4 = vrot.slane %v786_v1, 9  ;;  %v1958_v8 = vcombine.low %v2855_v26, %v724_v31 }
  0xbf   : > { %1604 = vmatmul.mubr.bf16.vlgmr.msra.gmra.mrb[8].mxu0 %v1953_v59  ;;  %1652 = vmatprep.mubr.bf16.mxu1 %v1959_v43  ;;  %v799_v59 = vrot.slane %v2835_v54, 5  ;;  %v778_v63 = vor.u32 %v777_v58, %v774_v53  ;;  %v807_v14 = vrot.slane %v2861_v34, 5  ;;  %v811_v15 = vrot.slane %v2863_v35, 5 }
  0xc0   : > { %2196 = vmatpush3.bf16.msra.mxu0 %v2323_v45  ;;  %1611 = vmatprep.mubr.bf16.mxu0 %v1956_v33  ;;  %v760_v45 = vrot.slane %v758_v36, 4  ;;  %v804_v57 = vsel %vm2678_vm15, %v1942_v4, %v803_v62  ;;  %v1944_v16 = vrot.slane %v788_v13, 9 }
  0xc1   : > { %2197 = vmatprep.subr.bf16.mxu0 %v2325_v2  ;;  %1653 = vmatmul.mubr.bf16.vlgmr.msra.gmra.mrb[8].mxu1 %v1957_v24  ;;  %v779_v6 = vrot.slane %v778_v63, 4  ;;  %v800_v54 = vsel %vm2678_vm15, %v1941_v3, %v799_v59 }
  0xc2   : > { %v764_v50 = vor.u32 %v763_v46, %v760_v45  ;;  %v1961_v9 = vcombine.low %v800_v54, %v804_v57  ;;  %v812_v19 = vsel %vm2678_vm15, %v1944_v16, %v811_v15 }
  0xc4   : > { %2198 = vmatpush3.bf16.msra.mxu0 %v2325_v2  ;;  %v765_v60 = vrot.slane %v764_v50, 4  ;;  %v783_v2 = vrot.slane %v781_v49, 5 }
  0xc5   : > { %2199 = vmatprep.subr.bf16.mxu0 %v2326_v18 }
  0xc6   : > { %v770_v5 = vsel %vm2684_vm0, %v765_v60, %v769_v52  ;;  %v784_v7 = vsel %vm2684_vm0, %v779_v6, %v783_v2 }
  0xc7   : > { %1612 = vmatmul.mubr.bf16.gmra.mrb[12].mxu0 %v1954_v44  ;;  %v1960_v10 = vcombine.low %v770_v5, %v784_v7 }
  0xc8   : > { %2200 = vmatpush3.bf16.msra.mxu0 %v2326_v18  ;;  %2211 = vmatprep.mubr.bf16.mxu0 %v1961_v9  ;;  %v808_v18 = vsel %vm2678_vm15, %v1943_v56, %v807_v14 }
  0xc9   : > { %2201 = vmatprep.subr.bf16.mxu0 %v2328_v42  ;;  %1660 = vmatprep.mubr.bf16.mxu1 %v1960_v10  ;;  %v1962_v20 = vcombine.low %v808_v18, %v812_v19 }
  0xca   : > { %1661 = vmatmul.mubr.bf16.gmra.mrb[12].mxu1 %v1958_v8 }
  0xcc   : > { %2202 = vmatpush3.bf16.msra.mxu0 %v2328_v42 }
  0xcd   : > { %2203 = vmatprep.subr.bf16.mxu0 %v2329_v51 }
  0xd0   : > { %2204 = vmatpush3.bf16.msra.mxu0 %v2329_v51 }
  0xd1   : > { %2205 = vmatprep.subr.bf16.mxu0 %v2330_v61 }
  0xd4   : > { %2206 = vmatpush3.bf16.msra.mxu0 %v2330_v61 }
  0xd5   : > { %2207 = vmatprep.subr.bf16.mxu0 %v2331_v11 }
  0xd8   : > { %2208 = vmatpush3.bf16.msra.mxu0 %v2331_v11 }
  0xd9   : > { %2209 = vmatprep.subr.bf16.mxu0 %v2332_v17 }
  0xdc   : > { %2210 = vmatpush3.bf16.msra.mxu0 %v2332_v17 }
  0xdf   : > { %2212 = vmatmul.mubr.bf16.vlgmr.msra.gmra.mrb[16].mxu0 %v1962_v20 }
 0x172   : > { %v2089_v23 = vpop.f32.mrb[0].mxu0 }
 0x173   : > { %v2117_v21 = vpop.f32.mrb[0].mxu1  ;;  %v2090_v26 = vpop.f32.mrb[1].mxu0 }
 0x174   : > { %v2118_v22 = vpop.f32.mrb[1].mxu1  ;;  %v2091_v28 = vadd.f32 %v2090_v26, %v2089_v23  ;;  %v2092_v29 = vpop.f32.mrb[2].mxu0 }
 0x175   : > { %v2119_v24 = vadd.f32 %v2118_v22, %v2117_v21  ;;  %v2120_v25 = vpop.f32.mrb[2].mxu1  ;;  %v2093_v31 = vpop.f32.mrb[3].mxu0 }
 0x176   : > { %v2121_v27 = vpop.f32.mrb[3].mxu1  ;;  %v2094_v33 = vadd.f32 %v2093_v31, %v2092_v29 }
 0x177   : > { %v2122_v30 = vadd.f32 %v2121_v27, %v2120_v25  ;;  %v1557_v32 = vadd.f32 %v2119_v24, %v2091_v28 }
 0x179   : > { %v1560_v34 = vadd.f32 %v2122_v30, %v2094_v33 }
 0x17e   : > { %v2123_v55 = vpop.f32.mrb[4].mxu1  ;;  %v2095_v35 = vpop.f32.mrb[4].mxu0 }
 0x17f   : > { %v2124_v36 = vpop.f32.mrb[5].mxu1  ;;  %v2096_v37 = vpop.f32.mrb[5].mxu0 }
 0x180   : > { %v2125_v38 = vadd.f32 %v2124_v36, %v2123_v55  ;;  %v2126_v39 = vpop.f32.mrb[6].mxu1  ;;  %v2097_v40 = vadd.f32 %v2096_v37, %v2095_v35  ;;  %v2098_v41 = vpop.f32.mrb[6].mxu0 }
 0x181   : > { %v2127_v42 = vpop.f32.mrb[7].mxu1  ;;  %v2099_v43 = vpop.f32.mrb[7].mxu0 }
 0x182   : > { %v2128_v44 = vadd.f32 %v2127_v42, %v2126_v39  ;;  %v1565_v45 = vadd.f32 %v2125_v38, %v2097_v40  ;;  %v2100_v46 = vadd.f32 %v2099_v43, %v2098_v41 }
 0x184   : > { %v1568_v47 = vadd.f32 %v2128_v44, %v2100_v46 }
 0x192   : > { %v2145_v48 = vpop.f32.mrb[8].mxu0 }
 0x193   : > { %v2146_v49 = vpop.f32.mrb[9].mxu0 }
 0x194   : > { %v2147_v50 = vadd.f32 %v2146_v49, %v2145_v48  ;;  %v2148_v51 = vpop.f32.mrb[10].mxu0  ;;  %v2173_v62 = vpop.f32.mrb[8].mxu1 }
 0x195   : > { %v2149_v52 = vpop.f32.mrb[11].mxu0  ;;  %v2174_v2 = vpop.f32.mrb[9].mxu1 }
 0x196   : > { %v1606_v53 = vadd.f32 %v2147_v50, %v1557_v32  ;;  %v2150_v58 = vadd.f32 %v2149_v52, %v2148_v51  ;;  %v2175_v61 = vadd.f32 %v2174_v2, %v2173_v62  ;;  %v2176_v3 = vpop.f32.mrb[10].mxu1 }
 0x197   : > { %v2177_v5 = vpop.f32.mrb[11].mxu1 }
 0x198   : > { %v1609_v59 = vadd.f32 %v2150_v58, %v1560_v34  ;;  %v2178_v57 = vadd.f32 %v2177_v5, %v2176_v3  ;;  %v1655_v7 = vadd.f32 %v2175_v61, %v1606_v53 }
 0x19a   : > { %v2151_v60 = vpop.f32.mrb[12].mxu0  ;;  %v1658_v9 = vadd.f32 %v2178_v57, %v1609_v59 }
 0x19b   : > { %v2152_v63 = vpop.f32.mrb[13].mxu0 }
 0x19c   : > { %v2153_v0 = vadd.f32 %v2152_v63, %v2151_v60  ;;  %v2154_v1 = vpop.f32.mrb[14].mxu0 }
 0x19d   : > { %v2155_v4 = vpop.f32.mrb[15].mxu0  ;;  %v2179_v10 = vpop.f32.mrb[12].mxu1 }
 0x19e   : > { %v1614_v6 = vadd.f32 %v2153_v0, %v1565_v45  ;;  %v2156_v54 = vadd.f32 %v2155_v4, %v2154_v1  ;;  %v2180_v11 = vpop.f32.mrb[13].mxu1 }
 0x19f   : > { %v2181_v12 = vadd.f32 %v2180_v11, %v2179_v10  ;;  %v2182_v13 = vpop.f32.mrb[14].mxu1 }
 0x1a0   : > { %v1617_v8 = vadd.f32 %v2156_v54, %v1568_v47  ;;  %v2183_v14 = vpop.f32.mrb[15].mxu1 }
 0x1a1   : > { %v2184_v15 = vadd.f32 %v2183_v14, %v2182_v13  ;;  %v1663_v56 = vadd.f32 %v2181_v12, %v1614_v6 }
 0x1a3   : > { %v1666_v16 = vadd.f32 %v2184_v15, %v1617_v8 }
 0x1b2   : > { %v2213_v17 = vpop.f32.mrb[16].mxu0 }
 0x1b3   : > { %v1712_v18 = vadd.f32 %v2213_v17, %v1663_v56  ;;  %v1703_v19 = vpop.f32.mrb[17].mxu0 }
 0x1b4   : > { %v1704_v20 = vadd.f32 %v1703_v19, %v1655_v7  ;;  %v2214_v21 = vpop.f32.mrb[18].mxu0 }
 0x1b5   : > { %v1715_v22 = vadd.f32 %v2214_v21, %v1666_v16  ;;  %v1706_v23 = vpop.f32.mrb[19].mxu0 }
 0x1b6   : > { %v1707_v24 = vadd.f32 %v1706_v23, %v1658_v9 }
 0x1b7   : > { %v1719_v25 = vpack.c.bf16 %v1715_v22, %v1712_v18 }
 0x1b8   : > { %v1718_v26 = vpack.c.bf16 %v1707_v24, %v1704_v20 }
 0x1b9   : > { %2072 = vst [vmem:[%s2463_s17 + $0x8] sm:$0xff] %v1719_v25   ;;  %v1740_v27 = vunpack.c.l.bf16 %v1719_v25  ;;  %v1741_v30 = vunpack.c.h.bf16 %v1719_v25 }
 0x1ba   : > { %2065 = vst [vmem:[%s2463_s17] sm:$0xff] %v1718_v26   ;;  %v1738_v28 = vunpack.c.l.bf16 %v1718_v26  ;;  %v1739_v29 = vunpack.c.h.bf16 %v1718_v26 }
 0x1bb   : > { %v1753_v34 = vmul.f32 %v1740_v27, %v1740_v27  ;;  %v1754_v36 = vmul.f32 %v1741_v30, %v1741_v30 }
 0x1bc   : > { %v1742_v31 = vadd.f32 %v1739_v29, %v1738_v28  ;;  %v1751_v32 = vmul.f32 %v1738_v28, %v1738_v28  ;;  %v1752_v33 = vmul.f32 %v1739_v29, %v1739_v29 }
 0x1be   : > { %v1743_v55 = vadd.f32 %v1742_v31, %v1740_v27  ;;  %v1755_v35 = vadd.f32 %v1752_v33, %v1751_v32 }
 0x1c0   : > { %v1744_v37 = vadd.f32 %v1743_v55, %v1741_v30  ;;  %v1756_v38 = vadd.f32 %v1755_v35, %v1753_v34 }
 0x1c2   : > { %v1745_v39 = vrot.slane %v1744_v37, 4  ;;  %v1757_v40 = vadd.f32 %v1756_v38, %v1754_v36 }
 0x1c4   : > { %v1746_v41 = vadd.f32 %v1745_v39, %v1744_v37  ;;  %v1758_v42 = vrot.slane %v1757_v40, 4 }
 0x1c6   : > { %v1747_v43 = vrot.slane %v1746_v41, 2  ;;  %v1759_v44 = vadd.f32 %v1758_v42, %v1757_v40 }
 0x1c8   : > { %v1748_v45 = vadd.f32 %v1747_v43, %v1746_v41  ;;  %v1760_v46 = vrot.slane %v1759_v44, 2 }
 0x1ca   : > { %v1749_v47 = vrot.slane %v1748_v45, 1  ;;  %v1761_v48 = vadd.f32 %v1760_v46, %v1759_v44 }
 0x1cc   : > { %v1762_v49 = vrot.slane %v1761_v48, 1  ;;  %v1750_v50 = vadd.f32 %v1749_v47, %v1748_v45 }
 0x1ce   : > { %v1763_v51 = vadd.f32 %v1762_v49, %v1761_v48 }
 0x1d0   : > { %v1765_v52 = vsel %vm417_vm7, %v1750_v50, %v1763_v51 }
 0x1d1   : > { %1766 = vst [vmem:[%s2473_s7] sm:$0x3] %v1765_v52 }
 0x1d2 PF: > { %s16_s22 = sadd.s32 1, %s2371_s22   ;;  %s2946_s18 = smov %s2363_s20 }
 0x1d3   : > { %p13_p2 = scmp.ge.s32.totalorder %s16_s22, 6   ;;  %s2947_s19 = smov %s2367_s21 }
 0x1d4   : > { %s2948_s20 = smov %s2951_s23  ;;  %s2949_s21 = smov %s2955_s24 }
 0x1d5   :  { %15 = sbr.rel (!%p13_p2) target bundleno = 3 (0x3), region = 105 }

</bundles_post_ra>
